<compile_context>
chip_gen: v6e
topology: v6e:2x2x1
jax: 0.10.0
libtpu: 0.0.40
codegen_flags: <defaults>
</compile_context>

<pallas_src>
import functools

import jax
import jax.numpy as jnp
from jax.experimental import pallas as pl
from jax.experimental.pallas import tpu as pltpu

EPS = 1e-5
EXPANSION = 4
LANE = 128     # channel dims padded to multiples of this (lane-dense stores)
TM = 256       # row tile for matmul kernels (good for v6e/v7x MXU)


def _rup(v, m):
    return (v + m - 1) // m * m


def _row_tile(m):
    return TM if m >= TM else _rup(max(m, 8), 8)


def _pad_rows(a, tm):
    m = a.shape[0]
    mp = _rup(m, tm)
    if mp != m:
        a = jnp.pad(a, ((0, mp - m), (0, 0)))
    return a


# ---------------------------------------------------------------------------
# Pallas kernels
# ---------------------------------------------------------------------------
def _bn_stats_kernel(x_ref, sum_ref, ssq_ref, acc_s, acc_q, *, m_real, tm):
    """Accumulate per-channel sum / sum-of-squares over a row-tiled grid."""
    i = pl.program_id(0)

    @pl.when(i == 0)
    def _():
        acc_s[...] = jnp.zeros_like(acc_s)
        acc_q[...] = jnp.zeros_like(acc_q)

    x = x_ref[...]
    # mask rows beyond the real row count (row padding must not affect stats)
    row = jax.lax.broadcasted_iota(jnp.int32, x.shape, 0) + i * tm
    x = jnp.where(row < m_real, x, 0.0)
    acc_s[...] += jnp.sum(x, axis=0, keepdims=True)
    acc_q[...] += jnp.sum(x * x, axis=0, keepdims=True)

    @pl.when(i == pl.num_programs(0) - 1)
    def _():
        sum_ref[...] = acc_s[...]
        ssq_ref[...] = acc_q[...]


def _bn_mm_kernel(a_ref, s_ref, t_ref, w_ref, b_ref, o_ref):
    """out = relu(a*scale+shift) @ w + bias   (BN-apply fused into the matmul)."""
    a = jnp.maximum(a_ref[...] * s_ref[...] + t_ref[...], 0.0)
    o_ref[...] = (
        jnp.dot(a.astype(jnp.bfloat16), w_ref[...],
                preferred_element_type=jnp.float32)
        + b_ref[...]
    )


def _bn_mm_convsc_kernel(a_ref, s_ref, t_ref, w_ref, b_ref,
                         x_ref, wsc_ref, bsc_ref, o_ref):
    """Final 1x1 conv with fused BN3-apply + ReLU and fused conv shortcut."""
    a = jnp.maximum(a_ref[...] * s_ref[...] + t_ref[...], 0.0)
    res = jnp.dot(a.astype(jnp.bfloat16), w_ref[...],
                  preferred_element_type=jnp.float32) + b_ref[...]
    sc = jnp.dot(x_ref[...].astype(jnp.bfloat16), wsc_ref[...],
                 preferred_element_type=jnp.float32) + bsc_ref[...]
    o_ref[...] = res + sc


def _bn_mm_addsc_kernel(a_ref, s_ref, t_ref, w_ref, b_ref, x_ref, o_ref):
    """Final 1x1 conv with fused BN3-apply + ReLU and fused identity shortcut."""
    a = jnp.maximum(a_ref[...] * s_ref[...] + t_ref[...], 0.0)
    o_ref[...] = (
        jnp.dot(a.astype(jnp.bfloat16), w_ref[...],
                preferred_element_type=jnp.float32)
        + b_ref[...] + x_ref[...]
    )


def _conv3x3_bn_kernel(a_ref, s_ref, t_ref, w_ref, b_ref, o_ref, pad_ref):
    """3x3 conv (pad=1) on one image, BN2-apply + ReLU fused, no im2col:
    zero-pad the activated image into a VMEM scratch and accumulate 9 taps."""
    _, ho, wo, c = a_ref.shape
    act = jnp.maximum(a_ref[0] * s_ref[...] + t_ref[...], 0.0)
    pad_ref[...] = jnp.zeros_like(pad_ref)
    pad_ref[1:1 + ho, 1:1 + wo, :] = act
    acc = jnp.zeros((ho * wo, c), jnp.float32) + b_ref[...]
    for dy in range(3):
        for dx in range(3):
            patch = pad_ref[dy:dy + ho, dx:dx + wo, :].reshape(ho * wo, c)
            acc = acc + jnp.dot(patch.astype(jnp.bfloat16), w_ref[dy * 3 + dx],
                                preferred_element_type=jnp.float32)
    o_ref[0] = acc.reshape(ho, wo, c)


# ---------------------------------------------------------------------------
# Pallas wrappers
# ---------------------------------------------------------------------------
def bn_scale_shift(x2d, m_real, gamma, beta):
    """Training-mode BN stats over the (real) rows -> per-channel scale/shift."""
    tm = _row_tile(m_real)
    xp = _pad_rows(x2d, tm)
    mp, c = xp.shape
    kern = functools.partial(_bn_stats_kernel, m_real=m_real, tm=tm)
    s, q = pl.pallas_call(
        kern,
        out_shape=(jax.ShapeDtypeStruct((1, c), jnp.float32),
                   jax.ShapeDtypeStruct((1, c), jnp.float32)),
        grid_spec=pltpu.PrefetchScalarGridSpec(
            num_scalar_prefetch=0,
            grid=(mp // tm,),
            in_specs=[pl.BlockSpec((tm, c), lambda i: (i, 0))],
            out_specs=[pl.BlockSpec((1, c), lambda i: (0, 0)),
                       pl.BlockSpec((1, c), lambda i: (0, 0))],
            scratch_shapes=[pltpu.VMEM((1, c), jnp.float32),
                            pltpu.VMEM((1, c), jnp.float32)],
        ),
        compiler_params=pltpu.CompilerParams(dimension_semantics=("arbitrary",)),
    )(xp)
    mean = s / m_real
    var = q / m_real - mean * mean        # biased variance (training-mode BN)
    scale = gamma * jax.lax.rsqrt(var + EPS)
    shift = beta - mean * scale
    return scale, shift


def bn_matmul(a2d, scale, shift, w_bf16, bias, shortcut=None, wsc_bf16=None,
              bsc=None):
    """out = relu(a*scale+shift) @ w + bias [+ fused shortcut], row-tiled."""
    m = a2d.shape[0]
    tm = _row_tile(m)
    a2d = _pad_rows(a2d, tm)
    mp, k = a2d.shape
    n = w_bf16.shape[1]

    in_specs = [
        pl.BlockSpec((tm, k), lambda i: (i, 0)),
        pl.BlockSpec((1, k), lambda i: (0, 0)),
        pl.BlockSpec((1, k), lambda i: (0, 0)),
        pl.BlockSpec((k, n), lambda i: (0, 0)),
        pl.BlockSpec((1, n), lambda i: (0, 0)),
    ]
    args = [a2d, scale, shift, w_bf16, bias.reshape(1, n)]

    if shortcut is None:
        kernel = _bn_mm_kernel
    elif wsc_bf16 is None:
        sc = _pad_rows(shortcut, tm)              # identity shortcut rows
        in_specs.append(pl.BlockSpec((tm, n), lambda i: (i, 0)))
        args.append(sc)
        kernel = _bn_mm_addsc_kernel
    else:
        sc = _pad_rows(shortcut, tm)              # raw-x rows for shortcut conv
        ks = sc.shape[1]
        in_specs += [pl.BlockSpec((tm, ks), lambda i: (i, 0)),
                     pl.BlockSpec((ks, n), lambda i: (0, 0)),
                     pl.BlockSpec((1, n), lambda i: (0, 0))]
        args += [sc, wsc_bf16, bsc.reshape(1, n)]
        kernel = _bn_mm_convsc_kernel

    out = pl.pallas_call(
        kernel,
        out_shape=jax.ShapeDtypeStruct((mp, n), jnp.float32),
        grid_spec=pltpu.PrefetchScalarGridSpec(
            num_scalar_prefetch=0,
            grid=(mp // tm,),
            in_specs=in_specs,
            out_specs=pl.BlockSpec((tm, n), lambda i: (i, 0)),
        ),
        compiler_params=pltpu.CompilerParams(dimension_semantics=("parallel",)),
    )(*args)
    return out[:m]


def conv3x3_bn(y_4d, scale, shift, w_bf16, bias):
    n, ho, wo, c = y_4d.shape
    return pl.pallas_call(
        _conv3x3_bn_kernel,
        out_shape=jax.ShapeDtypeStruct((n, ho, wo, c), jnp.float32),
        grid_spec=pltpu.PrefetchScalarGridSpec(
            num_scalar_prefetch=0,
            grid=(n,),
            in_specs=[
                pl.BlockSpec((1, ho, wo, c), lambda b: (b, 0, 0, 0)),
                pl.BlockSpec((1, c), lambda b: (0, 0)),
                pl.BlockSpec((1, c), lambda b: (0, 0)),
                pl.BlockSpec((9, c, c), lambda b: (0, 0, 0)),
                pl.BlockSpec((1, c), lambda b: (0, 0)),
            ],
            out_specs=pl.BlockSpec((1, ho, wo, c), lambda b: (b, 0, 0, 0)),
            scratch_shapes=[pltpu.VMEM((ho + 2, wo + 2, c), jnp.float32)],
        ),
        compiler_params=pltpu.CompilerParams(dimension_semantics=("parallel",)),
    )(y_4d, scale, shift, w_bf16, bias.reshape(1, c))


# ---------------------------------------------------------------------------
# PreActBottleNeck forward
# ---------------------------------------------------------------------------
def preact_bottleneck(x_nchw, p, stride):
    n, cin, h, w = x_nchw.shape
    cmid = p["w1"].shape[1]
    cout = p["w3"].shape[1]
    ho = (h - 1) // stride + 1
    wo = (w - 1) // stride + 1
    m_full = n * h * w
    m_out = n * ho * wo

    cin_p = _rup(cin, LANE)
    cmid_p = _rup(cmid, LANE)
    cout_p = _rup(cout, LANE)

    # layout: NCHW -> NHWC, channels zero-padded to lane width
    x_nhwc = jnp.transpose(x_nchw, (0, 2, 3, 1)).astype(jnp.float32)
    x_p = jnp.pad(x_nhwc, ((0, 0), (0, 0), (0, 0), (0, cin_p - cin)))
    x2d = x_p.reshape(m_full, cin_p)

    # padded params; matmul weights pre-cast to bf16 (f32 accumulate in-kernel)
    def vec(name, c, cp):
        return jnp.pad(p[name], (0, cp - c)).reshape(1, cp)

    g1, b1 = vec("g1", cin, cin_p), vec("b1", cin, cin_p)
    g2, b2 = vec("g2", cmid, cmid_p), vec("b2", cmid, cmid_p)
    g3, b3 = vec("g3", cmid, cmid_p), vec("b3", cmid, cmid_p)

    w1 = jnp.pad(p["w1"], ((0, cin_p - cin), (0, cmid_p - cmid))).astype(jnp.bfloat16)
    bw1 = jnp.pad(p["bw1"], (0, cmid_p - cmid))
    w2 = jnp.pad(p["w2"], ((0, 0), (0, 0), (0, cmid_p - cmid), (0, cmid_p - cmid))
                 ).reshape(9, cmid_p, cmid_p).astype(jnp.bfloat16)
    bw2 = jnp.pad(p["bw2"], (0, cmid_p - cmid))
    w3 = jnp.pad(p["w3"], ((0, cmid_p - cmid), (0, cout_p - cout))).astype(jnp.bfloat16)
    bw3 = jnp.pad(p["bw3"], (0, cout_p - cout))

    # BN1 statistics over ALL input pixels
    sc1, sh1 = bn_scale_shift(x2d, m_full, g1, b1)

    # strided 1x1-conv / shortcut input rows
    # TODO(synk): fold the stride subsample into the conv1/shortcut BlockSpec
    # index_map instead of materializing the strided slice.
    xs = x_p[:, ::stride, ::stride, :].reshape(m_out, cin_p)

    # conv1 (1x1, stride s) with fused BN1-apply + ReLU
    y1 = bn_matmul(xs, sc1, sh1, w1, bw1)

    # conv2 (3x3, pad=1) with fused BN2-apply + ReLU, 9-tap in-kernel accumulation
    sc2, sh2 = bn_scale_shift(y1, m_out, g2, b2)
    y2 = conv3x3_bn(y1.reshape(n, ho, wo, cmid_p), sc2, sh2, w2, bw2)
    y2_2d = y2.reshape(m_out, cmid_p)

    # conv3 (1x1) with fused BN3-apply + ReLU and fused shortcut add
    sc3, sh3 = bn_scale_shift(y2_2d, m_out, g3, b3)
    if p["wsc"] is not None:
        wsc = jnp.pad(p["wsc"], ((0, cin_p - cin), (0, cout_p - cout))).astype(jnp.bfloat16)
        bwsc = jnp.pad(p["bwsc"], (0, cout_p - cout))
        out = bn_matmul(y2_2d, sc3, sh3, w3, bw3,
                        shortcut=xs, wsc_bf16=wsc, bsc=bwsc)
    else:
        # identity shortcut (stride == 1 and cin == cout -> cin_p == cout_p)
        out = bn_matmul(y2_2d, sc3, sh3, w3, bw3, shortcut=xs)

    out = out[:, :cout].reshape(n, ho, wo, cout)
    return jnp.transpose(out, (0, 3, 1, 2))   # back to NCHW


# ---------------------------------------------------------------------------
# Deterministic parameter init (synthetic; shapes from the PyTorch __init__)
# ---------------------------------------------------------------------------
def init_params(key, in_channels, out_channels, stride):
    cin, cmid = in_channels, out_channels
    cout = out_channels * EXPANSION
    ks = jax.random.split(key, 8)

    def w(k, shape):
        return (0.1 * jax.random.normal(k, shape)).astype(jnp.float32)

    p = {
        "g1": jnp.ones((cin,), jnp.float32), "b1": jnp.zeros((cin,), jnp.float32),
        "w1": w(ks[0], (cin, cmid)), "bw1": w(ks[1], (cmid,)),
        "g2": jnp.ones((cmid,), jnp.float32), "b2": jnp.zeros((cmid,), jnp.float32),
        "w2": w(ks[2], (3, 3, cmid, cmid)), "bw2": w(ks[3], (cmid,)),
        "g3": jnp.ones((cmid,), jnp.float32), "b3": jnp.zeros((cmid,), jnp.float32),
        "w3": w(ks[4], (cmid, cout)), "bw3": w(ks[5], (cout,)),
    }
    if stride != 1 or cin != cout:
        p["wsc"] = w(ks[6], (cin, cout))
        p["bwsc"] = w(ks[7], (cout,))
    else:
        p["wsc"] = None
        p["bwsc"] = None
    return p


# ---------------------------------------------------------------------------
# Pure-JAX reference (independent: lax.conv in NCHW, like PyTorch)
# ---------------------------------------------------------------------------
def ref_forward(x, p, stride):
    def bn_relu_ref(t, g, b):
        mean = jnp.mean(t, axis=(0, 2, 3), keepdims=True)
        var = jnp.mean(jnp.square(t - mean), axis=(0, 2, 3), keepdims=True)
        y = (t - mean) * jax.lax.rsqrt(var + EPS) * g.reshape(1, -1, 1, 1) \
            + b.reshape(1, -1, 1, 1)
        return jnp.maximum(y, 0.0)

    def conv(t, w_oihw, b, s, pad):
        y = jax.lax.conv_general_dilated(
            t, w_oihw, (s, s), [(pad, pad), (pad, pad)],
            dimension_numbers=("NCHW", "OIHW", "NCHW"))
        return y + b.reshape(1, -1, 1, 1)

    w1 = jnp.transpose(p["w1"], (1, 0))[:, :, None, None]
    w2 = jnp.transpose(p["w2"], (3, 2, 0, 1))
    w3 = jnp.transpose(p["w3"], (1, 0))[:, :, None, None]

    t = bn_relu_ref(x, p["g1"], p["b1"])
    t = conv(t, w1, p["bw1"], stride, 0)
    t = bn_relu_ref(t, p["g2"], p["b2"])
    t = conv(t, w2, p["bw2"], 1, 1)
    t = bn_relu_ref(t, p["g3"], p["b3"])
    res = conv(t, w3, p["bw3"], 1, 0)

    if p["wsc"] is not None:
        wsc = jnp.transpose(p["wsc"], (1, 0))[:, :, None, None]
        sc = conv(x, wsc, p["bwsc"], stride, 0)
    else:
        sc = x
    return res + sc


if __name__ == "__main__":
    key = jax.random.PRNGKey(0)
    kx, kp = jax.random.split(key)

    # small shapes consistent with the module
    n, in_channels, h, w = 2, 16, 16, 16
    out_channels, stride = 8, 2        # -> Cout = 32, Ho = Wo = 8, conv shortcut

    x = jax.random.normal(kx, (n, in_channels, h, w), jnp.float32)
    params = init_params(kp, in_channels, out_channels, stride)

    fwd = jax.jit(functools.partial(preact_bottleneck, stride=stride))
    out = jax.block_until_ready(fwd(x, params))

    assert out.shape == (n, out_channels * EXPANSION, h // stride, w // stride), out.shape
    ref = ref_forward(x, params, stride)
    max_err = float(jnp.max(jnp.abs(out - ref)))
    assert jnp.allclose(out, ref, rtol=5e-2, atol=5e-2), f"max abs err = {max_err}"

    print("KERNEL_OK")
</pallas_src>

<mosaic_0001>
module attributes {stable_mosaic.version = 11 : i64} {
  func.func @_bn_stats_kernel(%arg0: i32, %arg1: memref<256x128xf32, #tpu.memory_space<vmem>>, %arg2: memref<1x128xf32, #tpu.memory_space<vmem>>, %arg3: memref<1x128xf32, #tpu.memory_space<vmem>>, %arg4: memref<1x128xf32, #tpu.memory_space<vmem>>, %arg5: memref<1x128xf32, #tpu.memory_space<vmem>>) attributes {dimension_semantics = [#tpu.dimension_semantics<arbitrary>], iteration_bounds = array<i64: 2>, scalar_prefetch = 0 : i64, scratch_operands = 2 : i64, tpu.core_type = #tpu.core_type<tc>, window_params = [{transform_indices = @transform_0, window_bounds = array<i64: 256, 128>}, {pipeline_mode = #tpu.pipeline_mode<synchronous>, transform_indices = @transform_1, window_bounds = array<i64: 1, 128>}, {pipeline_mode = #tpu.pipeline_mode<synchronous>, transform_indices = @transform_2, window_bounds = array<i64: 1, 128>}]} {
    %c0_i32 = arith.constant 0 : i32
    %0 = arith.cmpi eq, %arg0, %c0_i32 : i32
    %1 = arith.extui %0 : i1 to i32
    %c0_i32_0 = arith.constant 0 : i32
    %2 = arith.cmpi ne, %1, %c0_i32_0 : i32
    scf.if %2 {
      %cst_13 = arith.constant 0.000000e+00 : f32
      %26 = vector.broadcast %cst_13 : f32 to vector<1x128xf32>
      %c0_14 = arith.constant 0 : index
      %c0_15 = arith.constant 0 : index
      %27 = vector.load %arg4[%c0_14, %c0_15] : memref<1x128xf32, #tpu.memory_space<vmem>>, vector<1x128xf32>
      tpu.vector_store %arg4[%c0_14, %c0_15], %26 {strides = array<i32>} : memref<1x128xf32, #tpu.memory_space<vmem>>, vector<1x128xf32>,
      %cst_16 = arith.constant 0.000000e+00 : f32
      %28 = vector.broadcast %cst_16 : f32 to vector<1x128xf32>
      %c0_17 = arith.constant 0 : index
      %c0_18 = arith.constant 0 : index
      %29 = vector.load %arg5[%c0_17, %c0_18] : memref<1x128xf32, #tpu.memory_space<vmem>>, vector<1x128xf32>
      tpu.vector_store %arg5[%c0_17, %c0_18], %28 {strides = array<i32>} : memref<1x128xf32, #tpu.memory_space<vmem>>, vector<1x128xf32>,
    } else {
    }
    %c0 = arith.constant 0 : index
    %c0_1 = arith.constant 0 : index
    %3 = vector.load %arg1[%c0, %c0_1] : memref<256x128xf32, #tpu.memory_space<vmem>>, vector<256x128xf32>
    %4 = tpu.iota {dimensions = array<i32: 0>} : vector<256x128xi32>
    %c256_i32 = arith.constant 256 : i32
    %5 = arith.muli %arg0, %c256_i32 : i32
    %6 = vector.broadcast %5 : i32 to vector<256x128xi32>
    %7 = arith.addi %4, %6 : vector<256x128xi32>
    %c512_i32 = arith.constant 512 : i32
    %8 = vector.broadcast %c512_i32 : i32 to vector<256x128xi32>
    %9 = arith.cmpi slt, %7, %8 : vector<256x128xi32>
    %cst = arith.constant 0.000000e+00 : f32
    %10 = vector.broadcast %cst : f32 to vector<256x128xf32>
    %11 = arith.select %9, %3, %10 : vector<256x128xi1>, vector<256x128xf32>
    %c0_2 = arith.constant 0 : index
    %c0_3 = arith.constant 0 : index
    %12 = vector.load %arg4[%c0_2, %c0_3] : memref<1x128xf32, #tpu.memory_space<vmem>>, vector<1x128xf32>
    %cst_4 = arith.constant dense<0.000000e+00> : vector<128xf32>
    %13 = vector.multi_reduction <add>, %11, %cst_4 [0] : vector<256x128xf32> to vector<128xf32>
    %14 = vector.shape_cast %13 : vector<128xf32> to vector<1x128xf32>
    %15 = arith.addf %12, %14 : vector<1x128xf32>
    %c0_5 = arith.constant 0 : index
    %c0_6 = arith.constant 0 : index
    %16 = vector.load %arg4[%c0_5, %c0_6] : memref<1x128xf32, #tpu.memory_space<vmem>>, vector<1x128xf32>
    tpu.vector_store %arg4[%c0_5, %c0_6], %15 {strides = array<i32>} : memref<1x128xf32, #tpu.memory_space<vmem>>, vector<1x128xf32>,
    %c0_7 = arith.constant 0 : index
    %c0_8 = arith.constant 0 : index
    %17 = vector.load %arg5[%c0_7, %c0_8] : memref<1x128xf32, #tpu.memory_space<vmem>>, vector<1x128xf32>
    %18 = arith.mulf %11, %11 : vector<256x128xf32>
    %cst_9 = arith.constant dense<0.000000e+00> : vector<128xf32>
    %19 = vector.multi_reduction <add>, %18, %cst_9 [0] : vector<256x128xf32> to vector<128xf32>
    %20 = vector.shape_cast %19 : vector<128xf32> to vector<1x128xf32>
    %21 = arith.addf %17, %20 : vector<1x128xf32>
    %c0_10 = arith.constant 0 : index
    %c0_11 = arith.constant 0 : index
    %22 = vector.load %arg5[%c0_10, %c0_11] : memref<1x128xf32, #tpu.memory_space<vmem>>, vector<1x128xf32>
    tpu.vector_store %arg5[%c0_10, %c0_11], %21 {strides = array<i32>} : memref<1x128xf32, #tpu.memory_space<vmem>>, vector<1x128xf32>,
    %c1_i32 = arith.constant 1 : i32
    %23 = arith.cmpi eq, %arg0, %c1_i32 : i32
    %24 = arith.extui %23 : i1 to i32
    %c0_i32_12 = arith.constant 0 : i32
    %25 = arith.cmpi ne, %24, %c0_i32_12 : i32
    scf.if %25 {
      %c0_13 = arith.constant 0 : index
      %c0_14 = arith.constant 0 : index
      %26 = vector.load %arg4[%c0_13, %c0_14] : memref<1x128xf32, #tpu.memory_space<vmem>>, vector<1x128xf32>
      %c0_15 = arith.constant 0 : index
      %c0_16 = arith.constant 0 : index
      %27 = vector.load %arg2[%c0_15, %c0_16] : memref<1x128xf32, #tpu.memory_space<vmem>>, vector<1x128xf32>
      tpu.vector_store %arg2[%c0_15, %c0_16], %26 {strides = array<i32>} : memref<1x128xf32, #tpu.memory_space<vmem>>, vector<1x128xf32>,
      %c0_17 = arith.constant 0 : index
      %c0_18 = arith.constant 0 : index
      %28 = vector.load %arg5[%c0_17, %c0_18] : memref<1x128xf32, #tpu.memory_space<vmem>>, vector<1x128xf32>
      %c0_19 = arith.constant 0 : index
      %c0_20 = arith.constant 0 : index
      %29 = vector.load %arg3[%c0_19, %c0_20] : memref<1x128xf32, #tpu.memory_space<vmem>>, vector<1x128xf32>
      tpu.vector_store %arg3[%c0_19, %c0_20], %28 {strides = array<i32>} : memref<1x128xf32, #tpu.memory_space<vmem>>, vector<1x128xf32>,
    } else {
    }
    return
  }
  func.func @transform_0(%arg0: i32) -> (i32, i32) {
    %c0_i32 = arith.constant 0 : i32
    %c0_i32_0 = arith.constant 0 : i32
    return %arg0, %c0_i32 : i32, i32
  }
  func.func @transform_1(%arg0: i32) -> (i32, i32) {
    %c0_i32 = arith.constant 0 : i32
    %c0_i32_0 = arith.constant 0 : i32
    %c0_i32_1 = arith.constant 0 : i32
    return %c0_i32, %c0_i32_0 : i32, i32
  }
  func.func @transform_2(%arg0: i32) -> (i32, i32) {
    %c0_i32 = arith.constant 0 : i32
    %c0_i32_0 = arith.constant 0 : i32
    %c0_i32_1 = arith.constant 0 : i32
    return %c0_i32, %c0_i32_0 : i32, i32
  }
}

module attributes {stable_mosaic.version = 11 : i64} {
  func.func @_bn_stats_kernel(%arg0: i32, %arg1: memref<128x128xf32, #tpu.memory_space<vmem>>, %arg2: memref<1x128xf32, #tpu.memory_space<vmem>>, %arg3: memref<1x128xf32, #tpu.memory_space<vmem>>, %arg4: memref<1x128xf32, #tpu.memory_space<vmem>>, %arg5: memref<1x128xf32, #tpu.memory_space<vmem>>) attributes {dimension_semantics = [#tpu.dimension_semantics<arbitrary>], iteration_bounds = array<i64: 1>, scalar_prefetch = 0 : i64, scratch_operands = 2 : i64, tpu.core_type = #tpu.core_type<tc>, window_params = [{transform_indices = @transform_0, window_bounds = array<i64: 128, 128>}, {pipeline_mode = #tpu.pipeline_mode<synchronous>, transform_indices = @transform_1, window_bounds = array<i64: 1, 128>}, {pipeline_mode = #tpu.pipeline_mode<synchronous>, transform_indices = @transform_2, window_bounds = array<i64: 1, 128>}]} {
    %c0_i32 = arith.constant 0 : i32
    %0 = arith.cmpi eq, %arg0, %c0_i32 : i32
    %1 = arith.extui %0 : i1 to i32
    %c0_i32_0 = arith.constant 0 : i32
    %2 = arith.cmpi ne, %1, %c0_i32_0 : i32
    scf.if %2 {
      %cst_15 = arith.constant 0.000000e+00 : f32
      %26 = vector.broadcast %cst_15 : f32 to vector<1x128xf32>
      %c0_16 = arith.constant 0 : index
      %c0_17 = arith.constant 0 : index
      %27 = vector.load %arg4[%c0_16, %c0_17] : memref<1x128xf32, #tpu.memory_space<vmem>>, vector<1x128xf32>
      tpu.vector_store %arg4[%c0_16, %c0_17], %26 {strides = array<i32>} : memref<1x128xf32, #tpu.memory_space<vmem>>, vector<1x128xf32>,
      %cst_18 = arith.constant 0.000000e+00 : f32
      %28 = vector.broadcast %cst_18 : f32 to vector<1x128xf32>
      %c0_19 = arith.constant 0 : index
      %c0_20 = arith.constant 0 : index
      %29 = vector.load %arg5[%c0_19, %c0_20] : memref<1x128xf32, #tpu.memory_space<vmem>>, vector<1x128xf32>
      tpu.vector_store %arg5[%c0_19, %c0_20], %28 {strides = array<i32>} : memref<1x128xf32, #tpu.memory_space<vmem>>, vector<1x128xf32>,
    } else {
    }
    %c0 = arith.constant 0 : index
    %c0_1 = arith.constant 0 : index
    %3 = vector.load %arg1[%c0, %c0_1] : memref<128x128xf32, #tpu.memory_space<vmem>>, vector<128x128xf32>
    %4 = tpu.iota {dimensions = array<i32: 0>} : vector<128x128xi32>
    %c128_i32 = arith.constant 128 : i32
    %5 = arith.muli %arg0, %c128_i32 : i32
    %6 = vector.broadcast %5 : i32 to vector<128x128xi32>
    %7 = arith.addi %4, %6 : vector<128x128xi32>
    %c128_i32_2 = arith.constant 128 : i32
    %8 = vector.broadcast %c128_i32_2 : i32 to vector<128x128xi32>
    %9 = arith.cmpi slt, %7, %8 : vector<128x128xi32>
    %cst = arith.constant 0.000000e+00 : f32
    %10 = vector.broadcast %cst : f32 to vector<128x128xf32>
    %11 = arith.select %9, %3, %10 : vector<128x128xi1>, vector<128x128xf32>
    %c0_3 = arith.constant 0 : index
    %c0_4 = arith.constant 0 : index
    %12 = vector.load %arg4[%c0_3, %c0_4] : memref<1x128xf32, #tpu.memory_space<vmem>>, vector<1x128xf32>
    %cst_5 = arith.constant dense<0.000000e+00> : vector<128xf32>
    %13 = vector.multi_reduction <add>, %11, %cst_5 [0] : vector<128x128xf32> to vector<128xf32>
    %14 = vector.shape_cast %13 : vector<128xf32> to vector<1x128xf32>
    %15 = arith.addf %12, %14 : vector<1x128xf32>
    %c0_6 = arith.constant 0 : index
    %c0_7 = arith.constant 0 : index
    %16 = vector.load %arg4[%c0_6, %c0_7] : memref<1x128xf32, #tpu.memory_space<vmem>>, vector<1x128xf32>
    tpu.vector_store %arg4[%c0_6, %c0_7], %15 {strides = array<i32>} : memref<1x128xf32, #tpu.memory_space<vmem>>, vector<1x128xf32>,
    %c0_8 = arith.constant 0 : index
    %c0_9 = arith.constant 0 : index
    %17 = vector.load %arg5[%c0_8, %c0_9] : memref<1x128xf32, #tpu.memory_space<vmem>>, vector<1x128xf32>
    %18 = arith.mulf %11, %11 : vector<128x128xf32>
    %cst_10 = arith.constant dense<0.000000e+00> : vector<128xf32>
    %19 = vector.multi_reduction <add>, %18, %cst_10 [0] : vector<128x128xf32> to vector<128xf32>
    %20 = vector.shape_cast %19 : vector<128xf32> to vector<1x128xf32>
    %21 = arith.addf %17, %20 : vector<1x128xf32>
    %c0_11 = arith.constant 0 : index
    %c0_12 = arith.constant 0 : index
    %22 = vector.load %arg5[%c0_11, %c0_12] : memref<1x128xf32, #tpu.memory_space<vmem>>, vector<1x128xf32>
    tpu.vector_store %arg5[%c0_11, %c0_12], %21 {strides = array<i32>} : memref<1x128xf32, #tpu.memory_space<vmem>>, vector<1x128xf32>,
    %c0_i32_13 = arith.constant 0 : i32
    %23 = arith.cmpi eq, %arg0, %c0_i32_13 : i32
    %24 = arith.extui %23 : i1 to i32
    %c0_i32_14 = arith.constant 0 : i32
    %25 = arith.cmpi ne, %24, %c0_i32_14 : i32
    scf.if %25 {
      %c0_15 = arith.constant 0 : index
      %c0_16 = arith.constant 0 : index
      %26 = vector.load %arg4[%c0_15, %c0_16] : memref<1x128xf32, #tpu.memory_space<vmem>>, vector<1x128xf32>
      %c0_17 = arith.constant 0 : index
      %c0_18 = arith.constant 0 : index
      %27 = vector.load %arg2[%c0_17, %c0_18] : memref<1x128xf32, #tpu.memory_space<vmem>>, vector<1x128xf32>
      tpu.vector_store %arg2[%c0_17, %c0_18], %26 {strides = array<i32>} : memref<1x128xf32, #tpu.memory_space<vmem>>, vector<1x128xf32>,
      %c0_19 = arith.constant 0 : index
      %c0_20 = arith.constant 0 : index
      %28 = vector.load %arg5[%c0_19, %c0_20] : memref<1x128xf32, #tpu.memory_space<vmem>>, vector<1x128xf32>
      %c0_21 = arith.constant 0 : index
      %c0_22 = arith.constant 0 : index
      %29 = vector.load %arg3[%c0_21, %c0_22] : memref<1x128xf32, #tpu.memory_space<vmem>>, vector<1x128xf32>
      tpu.vector_store %arg3[%c0_21, %c0_22], %28 {strides = array<i32>} : memref<1x128xf32, #tpu.memory_space<vmem>>, vector<1x128xf32>,
    } else {
    }
    return
  }
  func.func @transform_0(%arg0: i32) -> (i32, i32) {
    %c0_i32 = arith.constant 0 : i32
    %c0_i32_0 = arith.constant 0 : i32
    return %arg0, %c0_i32 : i32, i32
  }
  func.func @transform_1(%arg0: i32) -> (i32, i32) {
    %c0_i32 = arith.constant 0 : i32
    %c0_i32_0 = arith.constant 0 : i32
    %c0_i32_1 = arith.constant 0 : i32
    return %c0_i32, %c0_i32_0 : i32, i32
  }
  func.func @transform_2(%arg0: i32) -> (i32, i32) {
    %c0_i32 = arith.constant 0 : i32
    %c0_i32_0 = arith.constant 0 : i32
    %c0_i32_1 = arith.constant 0 : i32
    return %c0_i32, %c0_i32_0 : i32, i32
  }
}

module attributes {stable_mosaic.version = 11 : i64} {
  func.func @_bn_mm_kernel(%arg0: i32, %arg1: memref<128x128xf32, #tpu.memory_space<vmem>>, %arg2: memref<1x128xf32, #tpu.memory_space<vmem>>, %arg3: memref<1x128xf32, #tpu.memory_space<vmem>>, %arg4: memref<128x128xbf16, #tpu.memory_space<vmem>>, %arg5: memref<1x128xf32, #tpu.memory_space<vmem>>, %arg6: memref<128x128xf32, #tpu.memory_space<vmem>>) attributes {dimension_semantics = [#tpu.dimension_semantics<parallel>], iteration_bounds = array<i64: 1>, scalar_prefetch = 0 : i64, scratch_operands = 0 : i64, tpu.core_type = #tpu.core_type<tc>, window_params = [{transform_indices = @transform_0, window_bounds = array<i64: 128, 128>}, {pipeline_mode = #tpu.pipeline_mode<synchronous>, transform_indices = @transform_1, window_bounds = array<i64: 1, 128>}, {pipeline_mode = #tpu.pipeline_mode<synchronous>, transform_indices = @transform_2, window_bounds = array<i64: 1, 128>}, {pipeline_mode = #tpu.pipeline_mode<synchronous>, transform_indices = @transform_3, window_bounds = array<i64: 128, 128>}, {pipeline_mode = #tpu.pipeline_mode<synchronous>, transform_indices = @transform_4, window_bounds = array<i64: 1, 128>}, {transform_indices = @transform_5, window_bounds = array<i64: 128, 128>}]} {
    %c0 = arith.constant 0 : index
    %c0_0 = arith.constant 0 : index
    %0 = vector.load %arg1[%c0, %c0_0] : memref<128x128xf32, #tpu.memory_space<vmem>>, vector<128x128xf32>
    %c0_1 = arith.constant 0 : index
    %c0_2 = arith.constant 0 : index
    %1 = vector.load %arg2[%c0_1, %c0_2] : memref<1x128xf32, #tpu.memory_space<vmem>>, vector<1x128xf32>
    %2 = vector.broadcast %1 : vector<1x128xf32> to vector<128x128xf32>
    %3 = arith.mulf %0, %2 : vector<128x128xf32>
    %c0_3 = arith.constant 0 : index
    %c0_4 = arith.constant 0 : index
    %4 = vector.load %arg3[%c0_3, %c0_4] : memref<1x128xf32, #tpu.memory_space<vmem>>, vector<1x128xf32>
    %5 = vector.broadcast %4 : vector<1x128xf32> to vector<128x128xf32>
    %6 = arith.addf %3, %5 : vector<128x128xf32>
    %cst = arith.constant 0.000000e+00 : f32
    %7 = vector.broadcast %cst : f32 to vector<128x128xf32>
    %8 = arith.maximumf %6, %7 : vector<128x128xf32>
    %9 = arith.truncf %8 : vector<128x128xf32> to vector<128x128xbf16>
    %c0_5 = arith.constant 0 : index
    %c0_6 = arith.constant 0 : index
    %10 = vector.load %arg4[%c0_5, %c0_6] : memref<128x128xbf16, #tpu.memory_space<vmem>>, vector<128x128xbf16>
    %cst_7 = arith.constant dense<0.000000e+00> : vector<128x128xf32>
    %11 = tpu.matmul %9, %10, %cst_7 {dimension_numbers = #tpu.dot_dimension_numbers<[1], [0], [0], [1], [0, 0, 1, 1], [], []>} : vector<128x128xbf16>, vector<128x128xbf16>, vector<128x128xf32> -> vector<128x128xf32>
    %c0_8 = arith.constant 0 : index
    %c0_9 = arith.constant 0 : index
    %12 = vector.load %arg5[%c0_8, %c0_9] : memref<1x128xf32, #tpu.memory_space<vmem>>, vector<1x128xf32>
    %13 = vector.broadcast %12 : vector<1x128xf32> to vector<128x128xf32>
    %14 = arith.addf %11, %13 : vector<128x128xf32>
    %c0_10 = arith.constant 0 : index
    %c0_11 = arith.constant 0 : index
    %15 = vector.load %arg6[%c0_10, %c0_11] : memref<128x128xf32, #tpu.memory_space<vmem>>, vector<128x128xf32>
    tpu.vector_store %arg6[%c0_10, %c0_11], %14 {strides = array<i32>} : memref<128x128xf32, #tpu.memory_space<vmem>>, vector<128x128xf32>,
    return
  }
  func.func @transform_0(%arg0: i32) -> (i32, i32) {
    %c0_i32 = arith.constant 0 : i32
    %c0_i32_0 = arith.constant 0 : i32
    return %arg0, %c0_i32 : i32, i32
  }
  func.func @transform_1(%arg0: i32) -> (i32, i32) {
    %c0_i32 = arith.constant 0 : i32
    %c0_i32_0 = arith.constant 0 : i32
    %c0_i32_1 = arith.constant 0 : i32
    return %c0_i32, %c0_i32_0 : i32, i32
  }
  func.func @transform_2(%arg0: i32) -> (i32, i32) {
    %c0_i32 = arith.constant 0 : i32
    %c0_i32_0 = arith.constant 0 : i32
    %c0_i32_1 = arith.constant 0 : i32
    return %c0_i32, %c0_i32_0 : i32, i32
  }
  func.func @transform_3(%arg0: i32) -> (i32, i32) {
    %c0_i32 = arith.constant 0 : i32
    %c0_i32_0 = arith.constant 0 : i32
    %c0_i32_1 = arith.constant 0 : i32
    return %c0_i32, %c0_i32_0 : i32, i32
  }
  func.func @transform_4(%arg0: i32) -> (i32, i32) {
    %c0_i32 = arith.constant 0 : i32
    %c0_i32_0 = arith.constant 0 : i32
    %c0_i32_1 = arith.constant 0 : i32
    return %c0_i32, %c0_i32_0 : i32, i32
  }
  func.func @transform_5(%arg0: i32) -> (i32, i32) {
    %c0_i32 = arith.constant 0 : i32
    %c0_i32_0 = arith.constant 0 : i32
    return %arg0, %c0_i32 : i32, i32
  }
}

module attributes {stable_mosaic.version = 11 : i64} {
  func.func @_conv3x3_bn_kernel(%arg0: i32, %arg1: memref<1x8x8x128xf32, #tpu.memory_space<vmem>>, %arg2: memref<1x128xf32, #tpu.memory_space<vmem>>, %arg3: memref<1x128xf32, #tpu.memory_space<vmem>>, %arg4: memref<9x128x128xbf16, #tpu.memory_space<vmem>>, %arg5: memref<1x128xf32, #tpu.memory_space<vmem>>, %arg6: memref<1x8x8x128xf32, #tpu.memory_space<vmem>>, %arg7: memref<10x10x128xf32, #tpu.memory_space<vmem>>) attributes {dimension_semantics = [#tpu.dimension_semantics<parallel>], iteration_bounds = array<i64: 2>, scalar_prefetch = 0 : i64, scratch_operands = 1 : i64, tpu.core_type = #tpu.core_type<tc>, window_params = [{transform_indices = @transform_0, window_bounds = array<i64: 1, 8, 8, 128>}, {pipeline_mode = #tpu.pipeline_mode<synchronous>, transform_indices = @transform_1, window_bounds = array<i64: 1, 128>}, {pipeline_mode = #tpu.pipeline_mode<synchronous>, transform_indices = @transform_2, window_bounds = array<i64: 1, 128>}, {pipeline_mode = #tpu.pipeline_mode<synchronous>, transform_indices = @transform_3, window_bounds = array<i64: 9, 128, 128>}, {pipeline_mode = #tpu.pipeline_mode<synchronous>, transform_indices = @transform_4, window_bounds = array<i64: 1, 128>}, {transform_indices = @transform_5, window_bounds = array<i64: 1, 8, 8, 128>}]} {
    %c0 = arith.constant 0 : index
    %c0_0 = arith.constant 0 : index
    %c0_1 = arith.constant 0 : index
    %c0_2 = arith.constant 0 : index
    %0 = vector.load %arg1[%c0, %c0_0, %c0_1, %c0_2] : memref<1x8x8x128xf32, #tpu.memory_space<vmem>>, vector<1x8x8x128xf32>
    %1 = vector.shape_cast %0 : vector<1x8x8x128xf32> to vector<8x8x128xf32>
    %c0_3 = arith.constant 0 : index
    %c0_4 = arith.constant 0 : index
    %2 = vector.load %arg2[%c0_3, %c0_4] : memref<1x128xf32, #tpu.memory_space<vmem>>, vector<1x128xf32>
    %3 = vector.shape_cast %2 : vector<1x128xf32> to vector<1x1x128xf32>
    %4 = vector.broadcast %3 : vector<1x1x128xf32> to vector<8x8x128xf32>
    %5 = arith.mulf %1, %4 : vector<8x8x128xf32>
    %c0_5 = arith.constant 0 : index
    %c0_6 = arith.constant 0 : index
    %6 = vector.load %arg3[%c0_5, %c0_6] : memref<1x128xf32, #tpu.memory_space<vmem>>, vector<1x128xf32>
    %7 = vector.shape_cast %6 : vector<1x128xf32> to vector<1x1x128xf32>
    %8 = vector.broadcast %7 : vector<1x1x128xf32> to vector<8x8x128xf32>
    %9 = arith.addf %5, %8 : vector<8x8x128xf32>
    %cst = arith.constant 0.000000e+00 : f32
    %10 = vector.broadcast %cst : f32 to vector<8x8x128xf32>
    %11 = arith.maximumf %9, %10 : vector<8x8x128xf32>
    %cst_7 = arith.constant 0.000000e+00 : f32
    %12 = vector.broadcast %cst_7 : f32 to vector<10x10x128xf32>
    %c0_8 = arith.constant 0 : index
    %c0_9 = arith.constant 0 : index
    %c0_10 = arith.constant 0 : index
    %13 = vector.load %arg7[%c0_8, %c0_9, %c0_10] : memref<10x10x128xf32, #tpu.memory_space<vmem>>, vector<10x10x128xf32>
    tpu.vector_store %arg7[%c0_8, %c0_9, %c0_10], %12 {strides = array<i32>} : memref<10x10x128xf32, #tpu.memory_space<vmem>>, vector<10x10x128xf32>,
    %c1 = arith.constant 1 : index
    %c1_11 = arith.constant 1 : index
    %c0_12 = arith.constant 0 : index
    %14 = vector.load %arg7[%c1, %c1_11, %c0_12] : memref<10x10x128xf32, #tpu.memory_space<vmem>>, vector<8x8x128xf32>
    tpu.vector_store %arg7[%c1, %c1_11, %c0_12], %11 {strides = array<i32>} : memref<10x10x128xf32, #tpu.memory_space<vmem>>, vector<8x8x128xf32>,
    %cst_13 = arith.constant 0.000000e+00 : f32
    %15 = vector.broadcast %cst_13 : f32 to vector<64x128xf32>
    %c0_14 = arith.constant 0 : index
    %c0_15 = arith.constant 0 : index
    %16 = vector.load %arg5[%c0_14, %c0_15] : memref<1x128xf32, #tpu.memory_space<vmem>>, vector<1x128xf32>
    %17 = vector.broadcast %16 : vector<1x128xf32> to vector<64x128xf32>
    %18 = arith.addf %15, %17 : vector<64x128xf32>
    %c0_16 = arith.constant 0 : index
    %c0_17 = arith.constant 0 : index
    %c0_18 = arith.constant 0 : index
    %19 = vector.load %arg7[%c0_16, %c0_17, %c0_18] : memref<10x10x128xf32, #tpu.memory_space<vmem>>, vector<8x8x128xf32>
    %20 = vector.shape_cast %19 : vector<8x8x128xf32> to vector<64x128xf32>
    %21 = arith.truncf %20 : vector<64x128xf32> to vector<64x128xbf16>
    %c0_19 = arith.constant 0 : index
    %c0_20 = arith.constant 0 : index
    %c0_21 = arith.constant 0 : index
    %22 = vector.load %arg4[%c0_19, %c0_20, %c0_21] : memref<9x128x128xbf16, #tpu.memory_space<vmem>>, vector<1x128x128xbf16>
    %23 = vector.shape_cast %22 : vector<1x128x128xbf16> to vector<128x128xbf16>
    %cst_22 = arith.constant dense<0.000000e+00> : vector<64x128xf32>
    %24 = tpu.matmul %21, %23, %cst_22 {dimension_numbers = #tpu.dot_dimension_numbers<[1], [0], [0], [1], [0, 0, 1, 1], [], []>} : vector<64x128xbf16>, vector<128x128xbf16>, vector<64x128xf32> -> vector<64x128xf32>
    %25 = arith.addf %18, %24 : vector<64x128xf32>
    %c0_23 = arith.constant 0 : index
    %c1_24 = arith.constant 1 : index
    %c0_25 = arith.constant 0 : index
    %26 = vector.load %arg7[%c0_23, %c1_24, %c0_25] : memref<10x10x128xf32, #tpu.memory_space<vmem>>, vector<8x8x128xf32>
    %27 = vector.shape_cast %26 : vector<8x8x128xf32> to vector<64x128xf32>
    %28 = arith.truncf %27 : vector<64x128xf32> to vector<64x128xbf16>
    %c1_26 = arith.constant 1 : index
    %c0_27 = arith.constant 0 : index
    %c0_28 = arith.constant 0 : index
    %29 = vector.load %arg4[%c1_26, %c0_27, %c0_28] : memref<9x128x128xbf16, #tpu.memory_space<vmem>>, vector<1x128x128xbf16>
    %30 = vector.shape_cast %29 : vector<1x128x128xbf16> to vector<128x128xbf16>
    %cst_29 = arith.constant dense<0.000000e+00> : vector<64x128xf32>
    %31 = tpu.matmul %28, %30, %cst_29 {dimension_numbers = #tpu.dot_dimension_numbers<[1], [0], [0], [1], [0, 0, 1, 1], [], []>} : vector<64x128xbf16>, vector<128x128xbf16>, vector<64x128xf32> -> vector<64x128xf32>
    %32 = arith.addf %25, %31 : vector<64x128xf32>
    %c0_30 = arith.constant 0 : index
    %c2 = arith.constant 2 : index
    %c0_31 = arith.constant 0 : index
    %33 = vector.load %arg7[%c0_30, %c2, %c0_31] : memref<10x10x128xf32, #tpu.memory_space<vmem>>, vector<8x8x128xf32>
    %34 = vector.shape_cast %33 : vector<8x8x128xf32> to vector<64x128xf32>
    %35 = arith.truncf %34 : vector<64x128xf32> to vector<64x128xbf16>
    %c2_32 = arith.constant 2 : index
    %c0_33 = arith.constant 0 : index
    %c0_34 = arith.constant 0 : index
    %36 = vector.load %arg4[%c2_32, %c0_33, %c0_34] : memref<9x128x128xbf16, #tpu.memory_space<vmem>>, vector<1x128x128xbf16>
    %37 = vector.shape_cast %36 : vector<1x128x128xbf16> to vector<128x128xbf16>
    %cst_35 = arith.constant dense<0.000000e+00> : vector<64x128xf32>
    %38 = tpu.matmul %35, %37, %cst_35 {dimension_numbers = #tpu.dot_dimension_numbers<[1], [0], [0], [1], [0, 0, 1, 1], [], []>} : vector<64x128xbf16>, vector<128x128xbf16>, vector<64x128xf32> -> vector<64x128xf32>
    %39 = arith.addf %32, %38 : vector<64x128xf32>
    %c1_36 = arith.constant 1 : index
    %c0_37 = arith.constant 0 : index
    %c0_38 = arith.constant 0 : index
    %40 = vector.load %arg7[%c1_36, %c0_37, %c0_38] : memref<10x10x128xf32, #tpu.memory_space<vmem>>, vector<8x8x128xf32>
    %41 = vector.shape_cast %40 : vector<8x8x128xf32> to vector<64x128xf32>
    %42 = arith.truncf %41 : vector<64x128xf32> to vector<64x128xbf16>
    %c3 = arith.constant 3 : index
    %c0_39 = arith.constant 0 : index
    %c0_40 = arith.constant 0 : index
    %43 = vector.load %arg4[%c3, %c0_39, %c0_40] : memref<9x128x128xbf16, #tpu.memory_space<vmem>>, vector<1x128x128xbf16>
    %44 = vector.shape_cast %43 : vector<1x128x128xbf16> to vector<128x128xbf16>
    %cst_41 = arith.constant dense<0.000000e+00> : vector<64x128xf32>
    %45 = tpu.matmul %42, %44, %cst_41 {dimension_numbers = #tpu.dot_dimension_numbers<[1], [0], [0], [1], [0, 0, 1, 1], [], []>} : vector<64x128xbf16>, vector<128x128xbf16>, vector<64x128xf32> -> vector<64x128xf32>
    %46 = arith.addf %39, %45 : vector<64x128xf32>
    %c1_42 = arith.constant 1 : index
    %c1_43 = arith.constant 1 : index
    %c0_44 = arith.constant 0 : index
    %47 = vector.load %arg7[%c1_42, %c1_43, %c0_44] : memref<10x10x128xf32, #tpu.memory_space<vmem>>, vector<8x8x128xf32>
    %48 = vector.shape_cast %47 : vector<8x8x128xf32> to vector<64x128xf32>
    %49 = arith.truncf %48 : vector<64x128xf32> to vector<64x128xbf16>
    %c4 = arith.constant 4 : index
    %c0_45 = arith.constant 0 : index
    %c0_46 = arith.constant 0 : index
    %50 = vector.load %arg4[%c4, %c0_45, %c0_46] : memref<9x128x128xbf16, #tpu.memory_space<vmem>>, vector<1x128x128xbf16>
    %51 = vector.shape_cast %50 : vector<1x128x128xbf16> to vector<128x128xbf16>
    %cst_47 = arith.constant dense<0.000000e+00> : vector<64x128xf32>
    %52 = tpu.matmul %49, %51, %cst_47 {dimension_numbers = #tpu.dot_dimension_numbers<[1], [0], [0], [1], [0, 0, 1, 1], [], []>} : vector<64x128xbf16>, vector<128x128xbf16>, vector<64x128xf32> -> vector<64x128xf32>
    %53 = arith.addf %46, %52 : vector<64x128xf32>
    %c1_48 = arith.constant 1 : index
    %c2_49 = arith.constant 2 : index
    %c0_50 = arith.constant 0 : index
    %54 = vector.load %arg7[%c1_48, %c2_49, %c0_50] : memref<10x10x128xf32, #tpu.memory_space<vmem>>, vector<8x8x128xf32>
    %55 = vector.shape_cast %54 : vector<8x8x128xf32> to vector<64x128xf32>
    %56 = arith.truncf %55 : vector<64x128xf32> to vector<64x128xbf16>
    %c5 = arith.constant 5 : index
    %c0_51 = arith.constant 0 : index
    %c0_52 = arith.constant 0 : index
    %57 = vector.load %arg4[%c5, %c0_51, %c0_52] : memref<9x128x128xbf16, #tpu.memory_space<vmem>>, vector<1x128x128xbf16>
    %58 = vector.shape_cast %57 : vector<1x128x128xbf16> to vector<128x128xbf16>
    %cst_53 = arith.constant dense<0.000000e+00> : vector<64x128xf32>
    %59 = tpu.matmul %56, %58, %cst_53 {dimension_numbers = #tpu.dot_dimension_numbers<[1], [0], [0], [1], [0, 0, 1, 1], [], []>} : vector<64x128xbf16>, vector<128x128xbf16>, vector<64x128xf32> -> vector<64x128xf32>
    %60 = arith.addf %53, %59 : vector<64x128xf32>
    %c2_54 = arith.constant 2 : index
    %c0_55 = arith.constant 0 : index
    %c0_56 = arith.constant 0 : index
    %61 = vector.load %arg7[%c2_54, %c0_55, %c0_56] : memref<10x10x128xf32, #tpu.memory_space<vmem>>, vector<8x8x128xf32>
    %62 = vector.shape_cast %61 : vector<8x8x128xf32> to vector<64x128xf32>
    %63 = arith.truncf %62 : vector<64x128xf32> to vector<64x128xbf16>
    %c6 = arith.constant 6 : index
    %c0_57 = arith.constant 0 : index
    %c0_58 = arith.constant 0 : index
    %64 = vector.load %arg4[%c6, %c0_57, %c0_58] : memref<9x128x128xbf16, #tpu.memory_space<vmem>>, vector<1x128x128xbf16>
    %65 = vector.shape_cast %64 : vector<1x128x128xbf16> to vector<128x128xbf16>
    %cst_59 = arith.constant dense<0.000000e+00> : vector<64x128xf32>
    %66 = tpu.matmul %63, %65, %cst_59 {dimension_numbers = #tpu.dot_dimension_numbers<[1], [0], [0], [1], [0, 0, 1, 1], [], []>} : vector<64x128xbf16>, vector<128x128xbf16>, vector<64x128xf32> -> vector<64x128xf32>
    %67 = arith.addf %60, %66 : vector<64x128xf32>
    %c2_60 = arith.constant 2 : index
    %c1_61 = arith.constant 1 : index
    %c0_62 = arith.constant 0 : index
    %68 = vector.load %arg7[%c2_60, %c1_61, %c0_62] : memref<10x10x128xf32, #tpu.memory_space<vmem>>, vector<8x8x128xf32>
    %69 = vector.shape_cast %68 : vector<8x8x128xf32> to vector<64x128xf32>
    %70 = arith.truncf %69 : vector<64x128xf32> to vector<64x128xbf16>
    %c7 = arith.constant 7 : index
    %c0_63 = arith.constant 0 : index
    %c0_64 = arith.constant 0 : index
    %71 = vector.load %arg4[%c7, %c0_63, %c0_64] : memref<9x128x128xbf16, #tpu.memory_space<vmem>>, vector<1x128x128xbf16>
    %72 = vector.shape_cast %71 : vector<1x128x128xbf16> to vector<128x128xbf16>
    %cst_65 = arith.constant dense<0.000000e+00> : vector<64x128xf32>
    %73 = tpu.matmul %70, %72, %cst_65 {dimension_numbers = #tpu.dot_dimension_numbers<[1], [0], [0], [1], [0, 0, 1, 1], [], []>} : vector<64x128xbf16>, vector<128x128xbf16>, vector<64x128xf32> -> vector<64x128xf32>
    %74 = arith.addf %67, %73 : vector<64x128xf32>
    %c2_66 = arith.constant 2 : index
    %c2_67 = arith.constant 2 : index
    %c0_68 = arith.constant 0 : index
    %75 = vector.load %arg7[%c2_66, %c2_67, %c0_68] : memref<10x10x128xf32, #tpu.memory_space<vmem>>, vector<8x8x128xf32>
    %76 = vector.shape_cast %75 : vector<8x8x128xf32> to vector<64x128xf32>
    %77 = arith.truncf %76 : vector<64x128xf32> to vector<64x128xbf16>
    %c8 = arith.constant 8 : index
    %c0_69 = arith.constant 0 : index
    %c0_70 = arith.constant 0 : index
    %78 = vector.load %arg4[%c8, %c0_69, %c0_70] : memref<9x128x128xbf16, #tpu.memory_space<vmem>>, vector<1x128x128xbf16>
    %79 = vector.shape_cast %78 : vector<1x128x128xbf16> to vector<128x128xbf16>
    %cst_71 = arith.constant dense<0.000000e+00> : vector<64x128xf32>
    %80 = tpu.matmul %77, %79, %cst_71 {dimension_numbers = #tpu.dot_dimension_numbers<[1], [0], [0], [1], [0, 0, 1, 1], [], []>} : vector<64x128xbf16>, vector<128x128xbf16>, vector<64x128xf32> -> vector<64x128xf32>
    %81 = arith.addf %74, %80 : vector<64x128xf32>
    %82 = vector.shape_cast %81 : vector<64x128xf32> to vector<8x8x128xf32>
    %c0_72 = arith.constant 0 : index
    %c0_73 = arith.constant 0 : index
    %c0_74 = arith.constant 0 : index
    %c0_75 = arith.constant 0 : index
    %83 = vector.load %arg6[%c0_72, %c0_73, %c0_74, %c0_75] : memref<1x8x8x128xf32, #tpu.memory_space<vmem>>, vector<1x8x8x128xf32>
    %84 = vector.shape_cast %83 : vector<1x8x8x128xf32> to vector<8x8x128xf32>
    %85 = vector.shape_cast %82 : vector<8x8x128xf32> to vector<1x8x8x128xf32>
    tpu.vector_store %arg6[%c0_72, %c0_73, %c0_74, %c0_75], %85 {strides = array<i32>} : memref<1x8x8x128xf32, #tpu.memory_space<vmem>>, vector<1x8x8x128xf32>,
    return
  }
  func.func @transform_0(%arg0: i32) -> (i32, i32, i32, i32) {
    %c0_i32 = arith.constant 0 : i32
    %c0_i32_0 = arith.constant 0 : i32
    %c0_i32_1 = arith.constant 0 : i32
    %c0_i32_2 = arith.constant 0 : i32
    return %arg0, %c0_i32, %c0_i32_0, %c0_i32_1 : i32, i32, i32, i32
  }
  func.func @transform_1(%arg0: i32) -> (i32, i32) {
    %c0_i32 = arith.constant 0 : i32
    %c0_i32_0 = arith.constant 0 : i32
    %c0_i32_1 = arith.constant 0 : i32
    return %c0_i32, %c0_i32_0 : i32, i32
  }
  func.func @transform_2(%arg0: i32) -> (i32, i32) {
    %c0_i32 = arith.constant 0 : i32
    %c0_i32_0 = arith.constant 0 : i32
    %c0_i32_1 = arith.constant 0 : i32
    return %c0_i32, %c0_i32_0 : i32, i32
  }
  func.func @transform_3(%arg0: i32) -> (i32, i32, i32) {
    %c0_i32 = arith.constant 0 : i32
    %c0_i32_0 = arith.constant 0 : i32
    %c0_i32_1 = arith.constant 0 : i32
    %c0_i32_2 = arith.constant 0 : i32
    return %c0_i32, %c0_i32_0, %c0_i32_1 : i32, i32, i32
  }
  func.func @transform_4(%arg0: i32) -> (i32, i32) {
    %c0_i32 = arith.constant 0 : i32
    %c0_i32_0 = arith.constant 0 : i32
    %c0_i32_1 = arith.constant 0 : i32
    return %c0_i32, %c0_i32_0 : i32, i32
  }
  func.func @transform_5(%arg0: i32) -> (i32, i32, i32, i32) {
    %c0_i32 = arith.constant 0 : i32
    %c0_i32_0 = arith.constant 0 : i32
    %c0_i32_1 = arith.constant 0 : i32
    %c0_i32_2 = arith.constant 0 : i32
    return %arg0, %c0_i32, %c0_i32_0, %c0_i32_1 : i32, i32, i32, i32
  }
}

module attributes {stable_mosaic.version = 11 : i64} {
  func.func @_bn_mm_convsc_kernel(%arg0: i32, %arg1: memref<128x128xf32, #tpu.memory_space<vmem>>, %arg2: memref<1x128xf32, #tpu.memory_space<vmem>>, %arg3: memref<1x128xf32, #tpu.memory_space<vmem>>, %arg4: memref<128x128xbf16, #tpu.memory_space<vmem>>, %arg5: memref<1x128xf32, #tpu.memory_space<vmem>>, %arg6: memref<128x128xf32, #tpu.memory_space<vmem>>, %arg7: memref<128x128xbf16, #tpu.memory_space<vmem>>, %arg8: memref<1x128xf32, #tpu.memory_space<vmem>>, %arg9: memref<128x128xf32, #tpu.memory_space<vmem>>) attributes {dimension_semantics = [#tpu.dimension_semantics<parallel>], iteration_bounds = array<i64: 1>, scalar_prefetch = 0 : i64, scratch_operands = 0 : i64, tpu.core_type = #tpu.core_type<tc>, window_params = [{transform_indices = @transform_0, window_bounds = array<i64: 128, 128>}, {pipeline_mode = #tpu.pipeline_mode<synchronous>, transform_indices = @transform_1, window_bounds = array<i64: 1, 128>}, {pipeline_mode = #tpu.pipeline_mode<synchronous>, transform_indices = @transform_2, window_bounds = array<i64: 1, 128>}, {pipeline_mode = #tpu.pipeline_mode<synchronous>, transform_indices = @transform_3, window_bounds = array<i64: 128, 128>}, {pipeline_mode = #tpu.pipeline_mode<synchronous>, transform_indices = @transform_4, window_bounds = array<i64: 1, 128>}, {transform_indices = @transform_5, window_bounds = array<i64: 128, 128>}, {pipeline_mode = #tpu.pipeline_mode<synchronous>, transform_indices = @transform_6, window_bounds = array<i64: 128, 128>}, {pipeline_mode = #tpu.pipeline_mode<synchronous>, transform_indices = @transform_7, window_bounds = array<i64: 1, 128>}, {transform_indices = @transform_8, window_bounds = array<i64: 128, 128>}]} {
    %c0 = arith.constant 0 : index
    %c0_0 = arith.constant 0 : index
    %0 = vector.load %arg1[%c0, %c0_0] : memref<128x128xf32, #tpu.memory_space<vmem>>, vector<128x128xf32>
    %c0_1 = arith.constant 0 : index
    %c0_2 = arith.constant 0 : index
    %1 = vector.load %arg2[%c0_1, %c0_2] : memref<1x128xf32, #tpu.memory_space<vmem>>, vector<1x128xf32>
    %2 = vector.broadcast %1 : vector<1x128xf32> to vector<128x128xf32>
    %3 = arith.mulf %0, %2 : vector<128x128xf32>
    %c0_3 = arith.constant 0 : index
    %c0_4 = arith.constant 0 : index
    %4 = vector.load %arg3[%c0_3, %c0_4] : memref<1x128xf32, #tpu.memory_space<vmem>>, vector<1x128xf32>
    %5 = vector.broadcast %4 : vector<1x128xf32> to vector<128x128xf32>
    %6 = arith.addf %3, %5 : vector<128x128xf32>
    %cst = arith.constant 0.000000e+00 : f32
    %7 = vector.broadcast %cst : f32 to vector<128x128xf32>
    %8 = arith.maximumf %6, %7 : vector<128x128xf32>
    %9 = arith.truncf %8 : vector<128x128xf32> to vector<128x128xbf16>
    %c0_5 = arith.constant 0 : index
    %c0_6 = arith.constant 0 : index
    %10 = vector.load %arg4[%c0_5, %c0_6] : memref<128x128xbf16, #tpu.memory_space<vmem>>, vector<128x128xbf16>
    %cst_7 = arith.constant dense<0.000000e+00> : vector<128x128xf32>
    %11 = tpu.matmul %9, %10, %cst_7 {dimension_numbers = #tpu.dot_dimension_numbers<[1], [0], [0], [1], [0, 0, 1, 1], [], []>} : vector<128x128xbf16>, vector<128x128xbf16>, vector<128x128xf32> -> vector<128x128xf32>
    %c0_8 = arith.constant 0 : index
    %c0_9 = arith.constant 0 : index
    %12 = vector.load %arg5[%c0_8, %c0_9] : memref<1x128xf32, #tpu.memory_space<vmem>>, vector<1x128xf32>
    %13 = vector.broadcast %12 : vector<1x128xf32> to vector<128x128xf32>
    %14 = arith.addf %11, %13 : vector<128x128xf32>
    %c0_10 = arith.constant 0 : index
    %c0_11 = arith.constant 0 : index
    %15 = vector.load %arg6[%c0_10, %c0_11] : memref<128x128xf32, #tpu.memory_space<vmem>>, vector<128x128xf32>
    %16 = arith.truncf %15 : vector<128x128xf32> to vector<128x128xbf16>
    %c0_12 = arith.constant 0 : index
    %c0_13 = arith.constant 0 : index
    %17 = vector.load %arg7[%c0_12, %c0_13] : memref<128x128xbf16, #tpu.memory_space<vmem>>, vector<128x128xbf16>
    %cst_14 = arith.constant dense<0.000000e+00> : vector<128x128xf32>
    %18 = tpu.matmul %16, %17, %cst_14 {dimension_numbers = #tpu.dot_dimension_numbers<[1], [0], [0], [1], [0, 0, 1, 1], [], []>} : vector<128x128xbf16>, vector<128x128xbf16>, vector<128x128xf32> -> vector<128x128xf32>
    %c0_15 = arith.constant 0 : index
    %c0_16 = arith.constant 0 : index
    %19 = vector.load %arg8[%c0_15, %c0_16] : memref<1x128xf32, #tpu.memory_space<vmem>>, vector<1x128xf32>
    %20 = vector.broadcast %19 : vector<1x128xf32> to vector<128x128xf32>
    %21 = arith.addf %18, %20 : vector<128x128xf32>
    %22 = arith.addf %14, %21 : vector<128x128xf32>
    %c0_17 = arith.constant 0 : index
    %c0_18 = arith.constant 0 : index
    %23 = vector.load %arg9[%c0_17, %c0_18] : memref<128x128xf32, #tpu.memory_space<vmem>>, vector<128x128xf32>
    tpu.vector_store %arg9[%c0_17, %c0_18], %22 {strides = array<i32>} : memref<128x128xf32, #tpu.memory_space<vmem>>, vector<128x128xf32>,
    return
  }
  func.func @transform_0(%arg0: i32) -> (i32, i32) {
    %c0_i32 = arith.constant 0 : i32
    %c0_i32_0 = arith.constant 0 : i32
    return %arg0, %c0_i32 : i32, i32
  }
  func.func @transform_1(%arg0: i32) -> (i32, i32) {
    %c0_i32 = arith.constant 0 : i32
    %c0_i32_0 = arith.constant 0 : i32
    %c0_i32_1 = arith.constant 0 : i32
    return %c0_i32, %c0_i32_0 : i32, i32
  }
  func.func @transform_2(%arg0: i32) -> (i32, i32) {
    %c0_i32 = arith.constant 0 : i32
    %c0_i32_0 = arith.constant 0 : i32
    %c0_i32_1 = arith.constant 0 : i32
    return %c0_i32, %c0_i32_0 : i32, i32
  }
  func.func @transform_3(%arg0: i32) -> (i32, i32) {
    %c0_i32 = arith.constant 0 : i32
    %c0_i32_0 = arith.constant 0 : i32
    %c0_i32_1 = arith.constant 0 : i32
    return %c0_i32, %c0_i32_0 : i32, i32
  }
  func.func @transform_4(%arg0: i32) -> (i32, i32) {
    %c0_i32 = arith.constant 0 : i32
    %c0_i32_0 = arith.constant 0 : i32
    %c0_i32_1 = arith.constant 0 : i32
    return %c0_i32, %c0_i32_0 : i32, i32
  }
  func.func @transform_5(%arg0: i32) -> (i32, i32) {
    %c0_i32 = arith.constant 0 : i32
    %c0_i32_0 = arith.constant 0 : i32
    return %arg0, %c0_i32 : i32, i32
  }
  func.func @transform_6(%arg0: i32) -> (i32, i32) {
    %c0_i32 = arith.constant 0 : i32
    %c0_i32_0 = arith.constant 0 : i32
    %c0_i32_1 = arith.constant 0 : i32
    return %c0_i32, %c0_i32_0 : i32, i32
  }
  func.func @transform_7(%arg0: i32) -> (i32, i32) {
    %c0_i32 = arith.constant 0 : i32
    %c0_i32_0 = arith.constant 0 : i32
    %c0_i32_1 = arith.constant 0 : i32
    return %c0_i32, %c0_i32_0 : i32, i32
  }
  func.func @transform_8(%arg0: i32) -> (i32, i32) {
    %c0_i32 = arith.constant 0 : i32
    %c0_i32_0 = arith.constant 0 : i32
    return %arg0, %c0_i32 : i32, i32
  }
}

</mosaic_0001>

<bundles_post_ra>
// kernel: preact_bottleneck.6
= control target key start
LH: loop header
LB: loop body
LE: loop exit
PB: predicated region body
PF: predicated region fallthrough
CT: control target
= control target key end

     0   :  { %s496_s9 = smov 0   ;;  %s624_s0 = inlined_call_operand.vmem [shape: f32[512,128], index: 0, kind: input, shape index: {}]   ;;  %s625_s1 = inlined_call_operand.vmem [shape: f32[1,128], index: 1, kind: output, shape index: {0}]   ;;  %s626_s2 = inlined_call_operand.vmem [shape: f32[1,128], index: 2, kind: output, shape index: {1}]  }
   0x1 LB: > { %s502_s10 = sadd.s32 4294967295, %s478_s9   ;;  %p455_p0 = scmp.ge.s32.totalorder %s478_s9, 1  ;;  %s478_s9 = sphi %s496_s9, %s13_s9  }
   0x2   : > { %p106_p1 = scmp.lt.s32.totalorder %s478_s9, 3 }
   0x4   : > { %p107_p2 = pnand %p455_p0, %p106_p1 }
   0x5   : > { %s456_s11 = sshll.u32 (!%p107_p2), %s502_s10, 5  ;;  %p458_p4 = scmp.ne.s32.totalorder (!%p107_p2), %s502_s10, 0 }
   0x6   : > { %110 = sbr.rel (%p107_p2) target bundleno = 117 (0x75), region = 24  ;;  %p124_p3 = scmp.lt.s32.totalorder (!%p107_p2), %s456_s11, 63 }
   0xb   : > { %s628_s11 = smov (!%p124_p3, %s456_s11), 63  ;;  %132 = sbr.rel (%p458_p4) target bundleno = 18 (0x12), region = 28 }
   0xc   : > { %s457_s12 = sshll.u32 %s628_s11, 3 }
   0xd   : > { %s510_s15 = scalar_lea.vmem %s624_s0, %s457_s12 }
  0x10   : > { %v480_v0 = vmov 0.0  }
  0x11   : > { %133 = vst [vmem:[#allocation2] sm:$0x1] %v480_v0  ;;  %134 = vst [vmem:[#allocation3] sm:$0x1] %v480_v0 }
  0x12 PF: > { %v167_v1 = vlaneseq  ;;  %s459_s16 = sshll.u32 %s502_s10, 8  ;;  %v135_v11 = vld [vmem:[%s510_s15] sm:$0xff]  ;;  %v136_v12 = vld [vmem:[%s510_s15 + $0x8] sm:$0xff]  ;;  %v137_v15 = vld [vmem:[%s510_s15 + $0x10] sm:$0xff]  ;;  %p460_p5 = scmp.ne.s32.totalorder %s502_s10, 1 }
  0x13   : > { %v517_v4 = vstv %s459_s16  ;;  %v138_v20 = vld [vmem:[%s510_s15 + $0x18] sm:$0xff]  ;;  %v139_v25 = vld [vmem:[%s510_s15 + $0x20] sm:$0xff]  ;;  %v140_v30 = vld [vmem:[%s510_s15 + $0x28] sm:$0xff] }
  0x14   : > { %v513_v2 = vshrl.u32 %v167_v1, 7  ;;  %v141_v37 = vld [vmem:[%s510_s15 + $0x30] sm:$0xff]  ;;  %v142_v43 = vld [vmem:[%s510_s15 + $0x38] sm:$0xff]  ;;  %v143_v50 = vld [vmem:[%s510_s15 + $0x40] sm:$0xff] }
  0x15   : > { %v144_v57 = vld [vmem:[%s510_s15 + $0x48] sm:$0xff]  ;;  %v145_v0 = vld [vmem:[%s510_s15 + $0x50] sm:$0xff] }
  0x16   : > { %v169_v3 = vadd.s32 8, %v513_v2  ;;  %v170_v5 = vadd.s32 16, %v513_v2  ;;  %v171_v6 = vadd.s32 24, %v513_v2  ;;  %v202_v7 = vadd.s32 %v517_v4, %v513_v2 }
  0x17   : > { %v172_v9 = vadd.s32 32, %v513_v2  ;;  %v173_v13 = vadd.s32 40, %v513_v2  ;;  %v174_v16 = vadd.s32 48, %v513_v2  ;;  %v175_v21 = vadd.s32 56, %v513_v2 }
  0x18   : > { %v203_v8 = vadd.s32 %v517_v4, %v169_v3  ;;  %v204_v10 = vadd.s32 %v517_v4, %v170_v5  ;;  %v205_v14 = vadd.s32 %v517_v4, %v171_v6  ;;  %vm234_vm0 = vcmp.lt.s32.totalorder %v202_v7, 512 }
  0x19   : > { %v206_v17 = vadd.s32 %v517_v4, %v172_v9  ;;  %v266_v18 = vsel %vm234_vm0, %v135_v11, 0.0  ;;  %v207_v22 = vadd.s32 %v517_v4, %v173_v13  ;;  %v176_v26 = vadd.s32 64, %v513_v2  ;;  %v146_v9 = vld [vmem:[%s510_s15 + $0x58] sm:$0xff] }
  0x1a   : > { %vm235_vm1 = vcmp.lt.s32.totalorder %v203_v8, 512  ;;  %vm236_vm2 = vcmp.lt.s32.totalorder %v204_v10, 512  ;;  %vm237_vm3 = vcmp.lt.s32.totalorder %v205_v14, 512  ;;  %v208_v27 = vadd.s32 %v517_v4, %v174_v16  ;;  %v147_v16 = vld [vmem:[%s510_s15 + $0x60] sm:$0xff] }
  0x1b   : > { %v267_v19 = vsel %vm235_vm1, %v136_v12, 0.0  ;;  %v268_v24 = vsel %vm236_vm2, %v137_v15, 0.0  ;;  %vm238_vm4 = vcmp.lt.s32.totalorder %v206_v17, 512  ;;  %v269_v29 = vsel %vm237_vm3, %v138_v20, 0.0 }
  0x1c   : > { %v299_v23 = vadd.f32 %v267_v19, %v266_v18  ;;  %v177_v31 = vadd.s32 72, %v513_v2  ;;  %v209_v32 = vadd.s32 %v517_v4, %v175_v21  ;;  %vm239_vm5 = vcmp.lt.s32.totalorder %v207_v22, 512 }
  0x1d   : > { %v270_v34 = vsel %vm238_vm4, %v139_v25, 0.0  ;;  %v339_v35 = vmul.f32 %v266_v18, %v266_v18  ;;  %v340_v36 = vmul.f32 %v267_v19, %v267_v19  ;;  %v178_v38 = vadd.s32 80, %v513_v2 }
  0x1e   : > { %v300_v28 = vadd.f32 %v299_v23, %v268_v24  ;;  %v210_v39 = vadd.s32 %v517_v4, %v176_v26  ;;  %vm240_vm6 = vcmp.lt.s32.totalorder %v208_v27, 512  ;;  %v271_v41 = vsel %vm239_vm5, %v140_v30, 0.0  ;;  %v148_v23 = vld [vmem:[%s510_s15 + $0x68] sm:$0xff]  ;;  %v149_v30 = vld [vmem:[%s510_s15 + $0x70] sm:$0xff] }
  0x1f   : > { %v341_v42 = vmul.f32 %v268_v24, %v268_v24  ;;  %v179_v44 = vadd.s32 88, %v513_v2  ;;  %v211_v45 = vadd.s32 %v517_v4, %v177_v31  ;;  %vm241_vm7 = vcmp.lt.s32.totalorder %v209_v32, 512 }
  0x20   : > { %v301_v33 = vadd.f32 %v300_v28, %v269_v29  ;;  %v272_v47 = vsel %vm240_vm6, %v141_v37, 0.0  ;;  %v342_v48 = vmul.f32 %v269_v29, %v269_v29  ;;  %v371_v49 = vadd.f32 %v340_v36, %v339_v35  ;;  %v150_v37 = vld [vmem:[%s510_s15 + $0x78] sm:$0xff] }
  0x21   : > { %v180_v51 = vadd.s32 96, %v513_v2  ;;  %v212_v52 = vadd.s32 %v517_v4, %v178_v38  ;;  %vm242_vm8 = vcmp.lt.s32.totalorder %v210_v39, 512  ;;  %v273_v54 = vsel %vm241_vm7, %v142_v43, 0.0 }
  0x22   : > { %v302_v40 = vadd.f32 %v301_v33, %v270_v34  ;;  %v343_v55 = vmul.f32 %v270_v34, %v270_v34  ;;  %v372_v56 = vadd.f32 %v371_v49, %v341_v42  ;;  %v181_v58 = vadd.s32 104, %v513_v2 }
  0x23   : > { %v213_v59 = vadd.s32 %v517_v4, %v179_v44  ;;  %vm243_vm9 = vcmp.lt.s32.totalorder %v211_v45, 512  ;;  %v274_v61 = vsel %vm242_vm8, %v143_v50, 0.0  ;;  %v344_v62 = vmul.f32 %v271_v41, %v271_v41  ;;  %v151_v44 = vld [vmem:[%s510_s15 + $0x80] sm:$0xff] }
  0x24   : > { %v303_v46 = vadd.f32 %v302_v40, %v271_v41  ;;  %v373_v63 = vadd.f32 %v372_v56, %v342_v48  ;;  %v182_v1 = vadd.s32 112, %v513_v2  ;;  %v214_v3 = vadd.s32 %v517_v4, %v180_v51  ;;  %v152_v51 = vld [vmem:[%s510_s15 + $0x88] sm:$0xff] }
  0x25   : > { %vm244_vm10 = vcmp.lt.s32.totalorder %v212_v52, 512  ;;  %v275_v6 = vsel %vm243_vm9, %v144_v57, 0.0  ;;  %v345_v7 = vmul.f32 %v272_v47, %v272_v47  ;;  %v183_v10 = vadd.s32 120, %v513_v2 }
  0x26   : > { %v304_v53 = vadd.f32 %v303_v46, %v272_v47  ;;  %v374_v8 = vadd.f32 %v373_v63, %v343_v55  ;;  %v215_v11 = vadd.s32 %v517_v4, %v181_v58  ;;  %vm245_vm11 = vcmp.lt.s32.totalorder %v213_v59, 512  ;;  %v153_v58 = vld [vmem:[%s510_s15 + $0x90] sm:$0xff] }
  0x27   : > { %v276_v13 = vsel %vm244_vm10, %v145_v0, 0.0  ;;  %v346_v14 = vmul.f32 %v273_v54, %v273_v54  ;;  %v184_v17 = vadd.s32 128, %v513_v2  ;;  %v216_v18 = vadd.s32 %v517_v4, %v182_v1  ;;  %v154_v1 = vld [vmem:[%s510_s15 + $0x98] sm:$0xff] }
  0x28   : > { %v305_v60 = vadd.f32 %v304_v53, %v273_v54  ;;  %v375_v15 = vadd.f32 %v374_v8, %v344_v62  ;;  %vm246_vm12 = vcmp.lt.s32.totalorder %v214_v3, 512  ;;  %v277_v20 = vsel %vm245_vm11, %v146_v9, 0.0 }
  0x29   : > { %v347_v21 = vmul.f32 %v274_v61, %v274_v61  ;;  %v185_v24 = vadd.s32 136, %v513_v2  ;;  %v217_v25 = vadd.s32 %v517_v4, %v183_v10  ;;  %vm247_vm13 = vcmp.lt.s32.totalorder %v215_v11, 512  ;;  %v155_v10 = vld [vmem:[%s510_s15 + $0xa0] sm:$0xff] }
  0x2a   : > { %v306_v5 = vadd.f32 %v305_v60, %v274_v61  ;;  %v376_v22 = vadd.f32 %v375_v15, %v345_v7  ;;  %v278_v27 = vsel %vm246_vm12, %v147_v16, 0.0  ;;  %v348_v28 = vmul.f32 %v275_v6, %v275_v6 }
  0x2b   : > { %v186_v31 = vadd.s32 144, %v513_v2  ;;  %v218_v32 = vadd.s32 %v517_v4, %v184_v17  ;;  %vm248_vm14 = vcmp.lt.s32.totalorder %v216_v18, 512  ;;  %v279_v34 = vsel %vm247_vm13, %v148_v23, 0.0  ;;  %v156_v17 = vld [vmem:[%s510_s15 + $0xa8] sm:$0xff] }
  0x2c   : > { %v307_v12 = vadd.f32 %v306_v5, %v275_v6  ;;  %v377_v29 = vadd.f32 %v376_v22, %v346_v14  ;;  %v349_v35 = vmul.f32 %v276_v13, %v276_v13  ;;  %v187_v38 = vadd.s32 152, %v513_v2 }
  0x2d   : > { %v219_v39 = vadd.s32 %v517_v4, %v185_v24  ;;  %vm249_vm15 = vcmp.lt.s32.totalorder %v217_v25, 512  ;;  %v280_v41 = vsel %vm248_vm14, %v149_v30, 0.0  ;;  %v350_v42 = vmul.f32 %v277_v20, %v277_v20  ;;  %v157_v24 = vld [vmem:[%s510_s15 + $0xb0] sm:$0xff] }
  0x2e   : > { %v308_v19 = vadd.f32 %v307_v12, %v276_v13  ;;  %v378_v36 = vadd.f32 %v377_v29, %v347_v21  ;;  %v188_v45 = vadd.s32 160, %v513_v2  ;;  %v220_v46 = vadd.s32 %v517_v4, %v186_v31  ;;  %v158_v31 = vld [vmem:[%s510_s15 + $0xb8] sm:$0xff] }
  0x2f   : > { %vm250_vm0 = vcmp.lt.s32.totalorder %v218_v32, 512  ;;  %v281_v48 = vsel %vm249_vm15, %v150_v37, 0.0  ;;  %v351_v49 = vmul.f32 %v278_v27, %v278_v27  ;;  %v189_v52 = vadd.s32 168, %v513_v2 }
  0x30   : > { %v309_v26 = vadd.f32 %v308_v19, %v277_v20  ;;  %v379_v43 = vadd.f32 %v378_v36, %v348_v28  ;;  %v221_v53 = vadd.s32 %v517_v4, %v187_v38  ;;  %vm251_vm1 = vcmp.lt.s32.totalorder %v219_v39, 512  ;;  %v159_v38 = vld [vmem:[%s510_s15 + $0xc0] sm:$0xff] }
  0x31   : > { %v282_v55 = vsel %vm250_vm0, %v151_v44, 0.0  ;;  %v352_v56 = vmul.f32 %v279_v34, %v279_v34  ;;  %v190_v59 = vadd.s32 176, %v513_v2  ;;  %v222_v60 = vadd.s32 %v517_v4, %v188_v45  ;;  %v160_v45 = vld [vmem:[%s510_s15 + $0xc8] sm:$0xff] }
  0x32   : > { %v310_v33 = vadd.f32 %v309_v26, %v278_v27  ;;  %v380_v50 = vadd.f32 %v379_v43, %v349_v35  ;;  %vm252_vm2 = vcmp.lt.s32.totalorder %v220_v46, 512  ;;  %v283_v62 = vsel %vm251_vm1, %v152_v51, 0.0 }
  0x33   : > { %v353_v63 = vmul.f32 %v280_v41, %v280_v41  ;;  %v191_v3 = vadd.s32 184, %v513_v2  ;;  %v223_v5 = vadd.s32 %v517_v4, %v189_v52  ;;  %vm253_vm3 = vcmp.lt.s32.totalorder %v221_v53, 512  ;;  %v161_v52 = vld [vmem:[%s510_s15 + $0xd0] sm:$0xff] }
  0x34   : > { %v311_v40 = vadd.f32 %v310_v33, %v279_v34  ;;  %v381_v57 = vadd.f32 %v380_v50, %v350_v42  ;;  %v284_v7 = vsel %vm252_vm2, %v153_v58, 0.0  ;;  %v354_v8 = vmul.f32 %v281_v48, %v281_v48 }
  0x35   : > { %v192_v11 = vadd.s32 192, %v513_v2  ;;  %v224_v12 = vadd.s32 %v517_v4, %v190_v59  ;;  %vm254_vm4 = vcmp.lt.s32.totalorder %v222_v60, 512  ;;  %v285_v14 = vsel %vm253_vm3, %v154_v1, 0.0  ;;  %v162_v59 = vld [vmem:[%s510_s15 + $0xd8] sm:$0xff] }
  0x36   : > { %v312_v47 = vadd.f32 %v311_v40, %v280_v41  ;;  %v382_v0 = vadd.f32 %v381_v57, %v351_v49  ;;  %v355_v15 = vmul.f32 %v282_v55, %v282_v55  ;;  %v193_v18 = vadd.s32 200, %v513_v2 }
  0x37   : > { %v225_v19 = vadd.s32 %v517_v4, %v191_v3  ;;  %vm255_vm5 = vcmp.lt.s32.totalorder %v223_v5, 512  ;;  %v286_v21 = vsel %vm254_vm4, %v155_v10, 0.0  ;;  %v356_v22 = vmul.f32 %v283_v62, %v283_v62  ;;  %v163_v3 = vld [vmem:[%s510_s15 + $0xe0] sm:$0xff]  ;;  %v164_v10 = vld [vmem:[%s510_s15 + $0xe8] sm:$0xff] }
  0x38   : > { %v313_v54 = vadd.f32 %v312_v47, %v281_v48  ;;  %v383_v9 = vadd.f32 %v382_v0, %v352_v56  ;;  %v194_v25 = vadd.s32 208, %v513_v2  ;;  %v226_v26 = vadd.s32 %v517_v4, %v192_v11 }
  0x39   : > { %vm256_vm6 = vcmp.lt.s32.totalorder %v224_v12, 512  ;;  %v287_v28 = vsel %vm255_vm5, %v156_v17, 0.0  ;;  %v357_v29 = vmul.f32 %v284_v7, %v284_v7  ;;  %v195_v32 = vadd.s32 216, %v513_v2 }
  0x3a   : > { %v314_v61 = vadd.f32 %v313_v54, %v282_v55  ;;  %v384_v16 = vadd.f32 %v383_v9, %v353_v63  ;;  %v227_v33 = vadd.s32 %v517_v4, %v193_v18  ;;  %vm257_vm7 = vcmp.lt.s32.totalorder %v225_v19, 512 }
  0x3b   : > { %v288_v35 = vsel %vm256_vm6, %v157_v24, 0.0  ;;  %v358_v36 = vmul.f32 %v285_v14, %v285_v14  ;;  %v196_v39 = vadd.s32 224, %v513_v2  ;;  %v228_v40 = vadd.s32 %v517_v4, %v194_v25 }
  0x3c   : > { %v315_v6 = vadd.f32 %v314_v61, %v283_v62  ;;  %v385_v23 = vadd.f32 %v384_v16, %v354_v8  ;;  %vm258_vm8 = vcmp.lt.s32.totalorder %v226_v26, 512  ;;  %v289_v42 = vsel %vm257_vm7, %v158_v31, 0.0 }
  0x3d   : > { %v359_v43 = vmul.f32 %v286_v21, %v286_v21  ;;  %v197_v46 = vadd.s32 232, %v513_v2  ;;  %v229_v47 = vadd.s32 %v517_v4, %v195_v32  ;;  %vm259_vm9 = vcmp.lt.s32.totalorder %v227_v33, 512 }
  0x3e   : > { %v316_v13 = vadd.f32 %v315_v6, %v284_v7  ;;  %v386_v30 = vadd.f32 %v385_v23, %v355_v15  ;;  %v290_v49 = vsel %vm258_vm8, %v159_v38, 0.0  ;;  %v360_v50 = vmul.f32 %v287_v28, %v287_v28  ;;  %v165_v15 = vld [vmem:[%s510_s15 + $0xf0] sm:$0xff] }
  0x3f   : > { %v198_v53 = vadd.s32 240, %v513_v2  ;;  %v230_v54 = vadd.s32 %v517_v4, %v196_v39  ;;  %vm260_vm10 = vcmp.lt.s32.totalorder %v228_v40, 512  ;;  %v291_v56 = vsel %vm259_vm9, %v160_v45, 0.0 }
  0x40   : > { %v317_v20 = vadd.f32 %v316_v13, %v285_v14  ;;  %v387_v37 = vadd.f32 %v386_v30, %v356_v22  ;;  %v361_v57 = vmul.f32 %v288_v35, %v288_v35  ;;  %v199_v60 = vadd.s32 248, %v513_v2 }
  0x41   : > { %v231_v61 = vadd.s32 %v517_v4, %v197_v46  ;;  %vm261_vm11 = vcmp.lt.s32.totalorder %v229_v47, 512  ;;  %v292_v63 = vsel %vm260_vm10, %v161_v52, 0.0  ;;  %v362_v0 = vmul.f32 %v289_v42, %v289_v42 }
  0x42   : > { %v318_v27 = vadd.f32 %v317_v20, %v286_v21  ;;  %v388_v44 = vadd.f32 %v387_v37, %v357_v29  ;;  %v232_v5 = vadd.s32 %v517_v4, %v198_v53  ;;  %vm262_vm12 = vcmp.lt.s32.totalorder %v230_v54, 512  ;;  %v166_v20 = vld [vmem:[%s510_s15 + $0xf8] sm:$0xff] }
  0x43   : > { %v293_v7 = vsel %vm261_vm11, %v162_v59, 0.0  ;;  %v363_v8 = vmul.f32 %v290_v49, %v290_v49  ;;  %v233_v2 = vadd.s32 %v517_v4, %v199_v60  ;;  %vm263_vm13 = vcmp.lt.s32.totalorder %v231_v61, 512 }
  0x44   : > { %v319_v34 = vadd.f32 %v318_v27, %v287_v28  ;;  %v389_v51 = vadd.f32 %v388_v44, %v358_v36  ;;  %v294_v12 = vsel %vm262_vm12, %v163_v3, 0.0  ;;  %v364_v13 = vmul.f32 %v291_v56, %v291_v56 }
  0x45   : > { %vm264_vm14 = vcmp.lt.s32.totalorder %v232_v5, 512  ;;  %v295_v17 = vsel %vm263_vm13, %v164_v10, 0.0  ;;  %v365_v18 = vmul.f32 %v292_v63, %v292_v63  ;;  %vm265_vm15 = vcmp.lt.s32.totalorder %v233_v2, 512 }
  0x46   : > { %v320_v41 = vadd.f32 %v319_v34, %v288_v35  ;;  %v390_v58 = vadd.f32 %v389_v51, %v359_v43  ;;  %v296_v22 = vsel %vm264_vm14, %v165_v15, 0.0  ;;  %v366_v23 = vmul.f32 %v293_v7, %v293_v7 }
  0x47   : > { %v297_v26 = vsel %vm265_vm15, %v166_v20, 0.0  ;;  %v367_v4 = vmul.f32 %v294_v12, %v294_v12  ;;  %v368_v29 = vmul.f32 %v295_v17, %v295_v17  ;;  %v369_v32 = vmul.f32 %v296_v22, %v296_v22 }
  0x48   : > { %v321_v48 = vadd.f32 %v320_v41, %v289_v42  ;;  %v391_v1 = vadd.f32 %v390_v58, %v360_v50  ;;  %v370_v35 = vmul.f32 %v297_v26, %v297_v26  ;;  %v298_v42 = vld [vmem:[#allocation2] sm:$0x1]  ;;  %v338_v50 = vld [vmem:[#allocation3] sm:$0x1] }
  0x4a   : > { %v322_v55 = vadd.f32 %v321_v48, %v290_v49  ;;  %v392_v9 = vadd.f32 %v391_v1, %v361_v57 }
  0x4c   : > { %v323_v62 = vadd.f32 %v322_v55, %v291_v56  ;;  %v393_v14 = vadd.f32 %v392_v9, %v362_v0 }
  0x4e   : > { %v324_v6 = vadd.f32 %v323_v62, %v292_v63  ;;  %v394_v19 = vadd.f32 %v393_v14, %v363_v8 }
  0x50   : > { %v325_v11 = vadd.f32 %v324_v6, %v293_v7  ;;  %v395_v24 = vadd.f32 %v394_v19, %v364_v13 }
  0x52   : > { %v326_v16 = vadd.f32 %v325_v11, %v294_v12  ;;  %v396_v27 = vadd.f32 %v395_v24, %v365_v18 }
  0x54   : > { %v327_v21 = vadd.f32 %v326_v16, %v295_v17  ;;  %v397_v30 = vadd.f32 %v396_v27, %v366_v23 }
  0x56   : > { %v328_v25 = vadd.f32 %v327_v21, %v296_v22  ;;  %v398_v33 = vadd.f32 %v397_v30, %v367_v4 }
  0x58   : > { %v329_v28 = vadd.f32 %v328_v25, %v297_v26  ;;  %v399_v36 = vadd.f32 %v398_v33, %v368_v29 }
  0x5a   : > { %v330_v31 = vrot.slane %v329_v28, 4  ;;  %v400_v38 = vadd.f32 %v399_v36, %v369_v32 }
  0x5c   : > { %v331_v34 = vadd.f32 %v330_v31, %v329_v28  ;;  %v401_v40 = vadd.f32 %v400_v38, %v370_v35 }
  0x5e   : > { %v332_v37 = vrot.slane %v331_v34, 2  ;;  %v402_v43 = vrot.slane %v401_v40, 4 }
  0x60   : > { %v333_v39 = vadd.f32 %v332_v37, %v331_v34  ;;  %v403_v45 = vadd.f32 %v402_v43, %v401_v40 }
  0x62   : > { %v334_v41 = vrot.slane %v333_v39, 1  ;;  %v404_v47 = vrot.slane %v403_v45, 2 }
  0x64   : > { %v335_v44 = vadd.f32 %v334_v41, %v333_v39  ;;  %v405_v48 = vadd.f32 %v404_v47, %v403_v45 }
  0x66   : > { %v336_v46 = vadd.f32 %v335_v44, %v298_v42  ;;  %v406_v49 = vrot.slane %v405_v48, 1 }
  0x68   : > { %337 = vst [vmem:[#allocation2] sm:$0x1] %v336_v46  ;;  %v407_v51 = vadd.f32 %v406_v49, %v405_v48  ;;  %413 = sbr.rel (%p460_p5) target bundleno = 117 (0x75), region = 32 }
  0x6a   : > { %v408_v52 = vadd.f32 %v407_v51, %v338_v50 }
  0x6c   : > { %409 = vst [vmem:[#allocation3] sm:$0x1] %v408_v52 }
  0x6f   : > { %v414_v53 = vld [vmem:[#allocation2] sm:$0x1] }
  0x70   : > { %415 = vst [vmem:[%s625_s1] sm:$0x1] %v414_v53 }
  0x73   : > { %v416_v54 = vld [vmem:[#allocation3] sm:$0x1] }
  0x74   : > { %417 = vst [vmem:[%s626_s2] sm:$0x1] %v416_v54 }
  0x75 PF: > { %s13_s9 = sadd.s32 1, %s478_s9  }
  0x76   : > { %p10_p6 = scmp.ge.s32.totalorder %s13_s9, 4  }
  0x78   :  { %12 = sbr.rel (!%p10_p6) target bundleno = 1 (0x1), region = 66 }

// kernel: preact_bottleneck.8
= control target key start
LH: loop header
LB: loop body
LE: loop exit
PB: predicated region body
PF: predicated region fallthrough
CT: control target
= control target key end

     0   :  { %v179_v0 = vmov 0.0   ;;  %s249_s0 = inlined_call_operand.vmem [shape: f32[128,128], index: 0, kind: input, shape index: {}]   ;;  %s250_s1 = inlined_call_operand.vmem [shape: f32[1,128], index: 1, kind: output, shape index: {0}]   ;;  %s251_s2 = inlined_call_operand.vmem [shape: f32[1,128], index: 2, kind: output, shape index: {1}]  }
   0x1   :  { %14 = vst [vmem:[#allocation2] sm:$0x1] %v179_v0  ;;  %15 = vst [vmem:[#allocation3] sm:$0x1] %v179_v0  ;;  %v16_v1 = vld [vmem:[%s249_s0] sm:$0xff]  ;;  %v17_v2 = vld [vmem:[%s249_s0 + $0x8] sm:$0xff] }
   0x2   :  { %v18_v3 = vld [vmem:[%s249_s0 + $0x10] sm:$0xff]  ;;  %v19_v4 = vld [vmem:[%s249_s0 + $0x18] sm:$0xff]  ;;  %v100_v5 = vadd.f32 %v17_v2, %v16_v1  ;;  %v124_v6 = vmul.f32 %v16_v1, %v16_v1  ;;  %v125_v7 = vmul.f32 %v17_v2, %v17_v2  ;;  %v20_v9 = vld [vmem:[%s249_s0 + $0x20] sm:$0xff] }
   0x3   :  { %v126_v8 = vmul.f32 %v18_v3, %v18_v3  ;;  %v127_v11 = vmul.f32 %v19_v4, %v19_v4  ;;  %v21_v13 = vld [vmem:[%s249_s0 + $0x28] sm:$0xff]  ;;  %v128_v15 = vmul.f32 %v20_v9, %v20_v9  ;;  %v22_v17 = vld [vmem:[%s249_s0 + $0x30] sm:$0xff]  ;;  %v23_v21 = vld [vmem:[%s249_s0 + $0x38] sm:$0xff] }
   0x4   :  { %v101_v10 = vadd.f32 %v100_v5, %v18_v3  ;;  %v140_v12 = vadd.f32 %v125_v7, %v124_v6  ;;  %v129_v19 = vmul.f32 %v21_v13, %v21_v13  ;;  %v130_v23 = vmul.f32 %v22_v17, %v22_v17  ;;  %v24_v25 = vld [vmem:[%s249_s0 + $0x40] sm:$0xff]  ;;  %v25_v29 = vld [vmem:[%s249_s0 + $0x48] sm:$0xff]  ;;  %v26_v33 = vld [vmem:[%s249_s0 + $0x50] sm:$0xff] }
   0x5   :  { %v131_v27 = vmul.f32 %v23_v21, %v23_v21  ;;  %v132_v31 = vmul.f32 %v24_v25, %v24_v25  ;;  %v133_v35 = vmul.f32 %v25_v29, %v25_v29  ;;  %v27_v37 = vld [vmem:[%s249_s0 + $0x58] sm:$0xff]  ;;  %v134_v39 = vmul.f32 %v26_v33, %v26_v33  ;;  %v28_v41 = vld [vmem:[%s249_s0 + $0x60] sm:$0xff]  ;;  %v29_v45 = vld [vmem:[%s249_s0 + $0x68] sm:$0xff] }
   0x6   :  { %v102_v14 = vadd.f32 %v101_v10, %v19_v4  ;;  %v141_v16 = vadd.f32 %v140_v12, %v126_v8  ;;  %v135_v43 = vmul.f32 %v27_v37, %v27_v37  ;;  %v136_v47 = vmul.f32 %v28_v41, %v28_v41  ;;  %v30_v49 = vld [vmem:[%s249_s0 + $0x70] sm:$0xff]  ;;  %v31_v53 = vld [vmem:[%s249_s0 + $0x78] sm:$0xff] }
   0x7   :  { %v137_v51 = vmul.f32 %v29_v45, %v29_v45  ;;  %v138_v55 = vmul.f32 %v30_v49, %v30_v49  ;;  %v139_v58 = vmul.f32 %v31_v53, %v31_v53 }
   0x8   :  { %v103_v18 = vadd.f32 %v102_v14, %v20_v9  ;;  %v142_v20 = vadd.f32 %v141_v16, %v127_v11  ;;  %v99_v7 = vld [vmem:[#allocation2] sm:$0x1]  ;;  %v123_v12 = vld [vmem:[#allocation3] sm:$0x1] }
   0xa   :  { %v104_v22 = vadd.f32 %v103_v18, %v21_v13  ;;  %v143_v24 = vadd.f32 %v142_v20, %v128_v15 }
   0xc   :  { %v105_v26 = vadd.f32 %v104_v22, %v22_v17  ;;  %v144_v28 = vadd.f32 %v143_v24, %v129_v19 }
   0xe   :  { %v106_v30 = vadd.f32 %v105_v26, %v23_v21  ;;  %v145_v32 = vadd.f32 %v144_v28, %v130_v23 }
  0x10   :  { %v107_v34 = vadd.f32 %v106_v30, %v24_v25  ;;  %v146_v36 = vadd.f32 %v145_v32, %v131_v27 }
  0x12   :  { %v108_v38 = vadd.f32 %v107_v34, %v25_v29  ;;  %v147_v40 = vadd.f32 %v146_v36, %v132_v31 }
  0x14   :  { %v109_v42 = vadd.f32 %v108_v38, %v26_v33  ;;  %v148_v44 = vadd.f32 %v147_v40, %v133_v35 }
  0x16   :  { %v110_v46 = vadd.f32 %v109_v42, %v27_v37  ;;  %v149_v48 = vadd.f32 %v148_v44, %v134_v39 }
  0x18   :  { %v111_v50 = vadd.f32 %v110_v46, %v28_v41  ;;  %v150_v52 = vadd.f32 %v149_v48, %v135_v43 }
  0x1a   :  { %v112_v54 = vadd.f32 %v111_v50, %v29_v45  ;;  %v151_v56 = vadd.f32 %v150_v52, %v136_v47 }
  0x1c   :  { %v113_v57 = vadd.f32 %v112_v54, %v30_v49  ;;  %v152_v59 = vadd.f32 %v151_v56, %v137_v51 }
  0x1e   :  { %v114_v60 = vadd.f32 %v113_v57, %v31_v53  ;;  %v153_v61 = vadd.f32 %v152_v59, %v138_v55 }
  0x20   :  { %v115_v62 = vrot.slane %v114_v60, 4  ;;  %v154_v63 = vadd.f32 %v153_v61, %v139_v58 }
  0x22   :  { %v116_v0 = vadd.f32 %v115_v62, %v114_v60  ;;  %v155_v1 = vrot.slane %v154_v63, 4 }
  0x24   :  { %v117_v2 = vrot.slane %v116_v0, 2  ;;  %v156_v3 = vadd.f32 %v155_v1, %v154_v63 }
  0x26   :  { %v118_v4 = vadd.f32 %v117_v2, %v116_v0  ;;  %v157_v5 = vrot.slane %v156_v3, 2 }
  0x28   :  { %v119_v6 = vrot.slane %v118_v4, 1  ;;  %v158_v8 = vadd.f32 %v157_v5, %v156_v3 }
  0x2a   :  { %v120_v9 = vadd.f32 %v119_v6, %v118_v4  ;;  %v159_v10 = vrot.slane %v158_v8, 1 }
  0x2c   :  { %v121_v11 = vadd.f32 %v120_v9, %v99_v7  ;;  %v160_v13 = vadd.f32 %v159_v10, %v158_v8 }
  0x2e   :  { %122 = vst [vmem:[#allocation2] sm:$0x1] %v121_v11  ;;  %v161_v14 = vadd.f32 %v160_v13, %v123_v12 }
  0x30   :  { %162 = vst [vmem:[#allocation3] sm:$0x1] %v161_v14 }
  0x35   :  { %v166_v15 = vld [vmem:[#allocation2] sm:$0x1] }
  0x36   :  { %167 = vst [vmem:[%s250_s1] sm:$0x1] %v166_v15 }
  0x37   :  { %v168_v16 = vld [vmem:[#allocation3] sm:$0x1] }
  0x38   :  { %169 = vst [vmem:[%s251_s2] sm:$0x1] %v168_v16 }

// kernel: preact_bottleneck.7
= control target key start
LH: loop header
LB: loop body
LE: loop exit
PB: predicated region body
PF: predicated region fallthrough
CT: control target
= control target key end

     0   :  { %s573_s3 = inlined_call_operand.vmem [shape: bf16[128,128], index: 3, kind: input, shape index: {}]   ;;  %s574_s0 = inlined_call_operand.vmem [shape: f32[128,128], index: 0, kind: input, shape index: {}]   ;;  %s575_s1 = inlined_call_operand.vmem [shape: f32[1,128], index: 1, kind: input, shape index: {}]   ;;  %s576_s2 = inlined_call_operand.vmem [shape: f32[1,128], index: 2, kind: input, shape index: {}]   ;;  %s577_s4 = inlined_call_operand.vmem [shape: f32[1,128], index: 4, kind: input, shape index: {}]   ;;  %s578_s5 = inlined_call_operand.vmem [shape: f32[128,128], index: 5, kind: output, shape index: {}]  }
   0x1   :  { %v370_v0 = vld [vmem:[%s573_s3 + $0x38] sm:$0xff]   ;;  %v371_v1 = vld [vmem:[%s573_s3 + $0x30] sm:$0xff]   ;;  %v372_v2 = vld [vmem:[%s573_s3 + $0x28] sm:$0xff]  }
   0x2   :  { %322 = vmatprep.subr.bf16.mxu0 %v370_v0  ;;  %354 = vmatprep.subr.bf16.mxu1 %v370_v0  ;;  %v373_v3 = vld [vmem:[%s573_s3 + $0x20] sm:$0xff]   ;;  %v22_v5 = vld [vmem:[%s574_s0 + $0x8] sm:$0xff]  ;;  %v374_v16 = vld [vmem:[%s573_s3 + $0x18] sm:$0xff]  }
   0x3   :  { %323 = vmatpush3.bf16.msra.mxu0 %v370_v0  ;;  %362 = vmatpush3.bf16.msra.mxu1 %v370_v0  ;;  %v21_v4 = vld [vmem:[%s574_s0] sm:$0xff]  ;;  %v30_v11 = vld [vmem:[%s574_s0 + $0x48] sm:$0xff]  ;;  %v23_v21 = vld [vmem:[%s574_s0 + $0x10] sm:$0xff] }
   0x4   :  { %324 = vmatprep.subr.bf16.mxu0 %v371_v1  ;;  %355 = vmatprep.subr.bf16.mxu1 %v371_v1  ;;  %v429_v6 = vld [vmem:[%s575_s1] ss:$0 sm:$0xff]  ;;  %v24_v24 = vld [vmem:[%s574_s0 + $0x18] sm:$0xff]  ;;  %v31_v25 = vld [vmem:[%s574_s0 + $0x50] sm:$0xff] }
   0x5   :  { %v44_v7 = vmul.f32 %v429_v6, %v21_v4  ;;  %v45_v8 = vmul.f32 %v429_v6, %v22_v5  ;;  %v436_v9 = vld [vmem:[%s576_s2] ss:$0 sm:$0xff]  ;;  %v53_v13 = vmul.f32 %v429_v6, %v30_v11  ;;  %v32_v26 = vld [vmem:[%s574_s0 + $0x58] sm:$0xff]  ;;  %v375_v27 = vld [vmem:[%s573_s3 + $0x10] sm:$0xff]   ;;  %v46_v34 = vmul.f32 %v429_v6, %v23_v21 }
   0x6   :  { %v29_v10 = vld [vmem:[%s574_s0 + $0x40] sm:$0xff]  ;;  %v26_v31 = vld [vmem:[%s574_s0 + $0x28] sm:$0xff]  ;;  %v47_v35 = vmul.f32 %v429_v6, %v24_v24  ;;  %v54_v36 = vmul.f32 %v429_v6, %v31_v25  ;;  %v55_v37 = vmul.f32 %v429_v6, %v32_v26  ;;  %v27_v48 = vld [vmem:[%s574_s0 + $0x30] sm:$0xff] }
   0x7   :  { %325 = vmatpush3.bf16.msra.mxu0 %v371_v1  ;;  %363 = vmatpush3.bf16.msra.mxu1 %v371_v1  ;;  %v52_v12 = vmul.f32 %v429_v6, %v29_v10  ;;  %v67_v14 = vadd.f32 %v436_v9, %v44_v7  ;;  %v68_v15 = vadd.f32 %v436_v9, %v45_v8  ;;  %v25_v29 = vld [vmem:[%s574_s0 + $0x20] sm:$0xff]  ;;  %v34_v33 = vld [vmem:[%s574_s0 + $0x68] sm:$0xff]  ;;  %v28_v52 = vld [vmem:[%s574_s0 + $0x38] sm:$0xff] }
   0x8   :  { %326 = vmatprep.subr.bf16.mxu0 %v372_v2  ;;  %356 = vmatprep.subr.bf16.mxu1 %v372_v2  ;;  %v76_v18 = vadd.f32 %v436_v9, %v53_v13  ;;  %v33_v32 = vld [vmem:[%s574_s0 + $0x60] sm:$0xff]  ;;  %v48_v38 = vmul.f32 %v429_v6, %v25_v29  ;;  %v49_v39 = vmul.f32 %v429_v6, %v26_v31  ;;  %v376_v42 = vld [vmem:[%s573_s3 + $0x8] sm:$0xff]   ;;  %v35_v53 = vld [vmem:[%s574_s0 + $0x70] sm:$0xff] }
   0x9   :  { %v75_v17 = vadd.f32 %v436_v9, %v52_v12  ;;  %v83_v19 = vmax.f32 %v67_v14, 0.0  ;;  %v84_v20 = vmax.f32 %v68_v15, 0.0  ;;  %v56_v40 = vmul.f32 %v429_v6, %v33_v32  ;;  %v36_v54 = vld [vmem:[%s574_s0 + $0x78] sm:$0xff]  ;;  %v377_v55 = vld [vmem:[%s573_s3] sm:$0xff]  }
   0xa   :  { %v92_v23 = vmax.f32 %v76_v18, 0.0  ;;  %v57_v41 = vmul.f32 %v429_v6, %v34_v33  ;;  %v69_v43 = vadd.f32 %v436_v9, %v46_v34  ;;  %v70_v44 = vadd.f32 %v436_v9, %v47_v35 }
   0xb   :  { %327 = vmatpush3.bf16.msra.mxu0 %v372_v2  ;;  %364 = vmatpush3.bf16.msra.mxu1 %v372_v2  ;;  %v91_v22 = vmax.f32 %v75_v17, 0.0  ;;  %v99_v28 = vpack.c.bf16 %v84_v20, %v83_v19  ;;  %v77_v45 = vadd.f32 %v436_v9, %v54_v36  ;;  %v78_v46 = vadd.f32 %v436_v9, %v55_v37 }
   0xc   :  { %328 = vmatprep.subr.bf16.mxu0 %v373_v3  ;;  %357 = vmatprep.subr.bf16.mxu1 %v373_v3  ;;  %v71_v47 = vadd.f32 %v436_v9, %v48_v38  ;;  %v72_v49 = vadd.f32 %v436_v9, %v49_v39  ;;  %v79_v50 = vadd.f32 %v436_v9, %v56_v40  ;;  %v85_v56 = vmax.f32 %v69_v43, 0.0 }
   0xd   :  { %v103_v30 = vpack.c.bf16 %v92_v23, %v91_v22  ;;  %338 = vmatprep.mubr.bf16.mxu0 %v99_v28  ;;  %v80_v51 = vadd.f32 %v436_v9, %v57_v41  ;;  %v86_v57 = vmax.f32 %v70_v44, 0.0  ;;  %v93_v58 = vmax.f32 %v77_v45, 0.0 }
   0xe   :  { %v94_v59 = vmax.f32 %v78_v46, 0.0  ;;  %v50_v60 = vmul.f32 %v429_v6, %v27_v48  ;;  %v51_v61 = vmul.f32 %v429_v6, %v28_v52  ;;  %v58_v62 = vmul.f32 %v429_v6, %v35_v53 }
   0xf   :  { %329 = vmatpush3.bf16.msra.mxu0 %v373_v3  ;;  %365 = vmatpush3.bf16.msra.mxu1 %v373_v3  ;;  %v59_v63 = vmul.f32 %v429_v6, %v36_v54  ;;  %v87_v0 = vmax.f32 %v71_v47, 0.0  ;;  %v88_v1 = vmax.f32 %v72_v49, 0.0  ;;  %v95_v2 = vmax.f32 %v79_v50, 0.0 }
  0x10   :  { %330 = vmatprep.subr.bf16.mxu0 %v374_v16  ;;  %358 = vmatprep.subr.bf16.mxu1 %v374_v16  ;;  %v96_v3 = vmax.f32 %v80_v51, 0.0  ;;  %v100_v4 = vpack.c.bf16 %v86_v57, %v85_v56  ;;  %v104_v5 = vpack.c.bf16 %v94_v59, %v93_v58  ;;  %v73_v7 = vadd.f32 %v436_v9, %v50_v60 }
  0x11   :  { %346 = vmatprep.mubr.bf16.mxu1 %v103_v30  ;;  %v74_v8 = vadd.f32 %v436_v9, %v51_v61  ;;  %v81_v10 = vadd.f32 %v436_v9, %v58_v62  ;;  %v82_v11 = vadd.f32 %v436_v9, %v59_v63  ;;  %v101_v6 = vpack.c.bf16 %v88_v1, %v87_v0  ;;  %v297_v9 = vld [vmem:[%s577_s4] ss:$0 sm:$0xff] }
  0x12   :  { %v105_v12 = vpack.c.bf16 %v96_v3, %v95_v2  ;;  %v89_v13 = vmax.f32 %v73_v7, 0.0 }
  0x13   :  { %331 = vmatpush3.bf16.msra.mxu0 %v374_v16  ;;  %366 = vmatpush3.bf16.msra.mxu1 %v374_v16  ;;  %v90_v14 = vmax.f32 %v74_v8, 0.0  ;;  %v97_v15 = vmax.f32 %v81_v10, 0.0  ;;  %v98_v16 = vmax.f32 %v82_v11, 0.0 }
  0x14   :  { %332 = vmatprep.subr.bf16.mxu0 %v375_v27  ;;  %359 = vmatprep.subr.bf16.mxu1 %v375_v27 }
  0x15   :  { %v102_v17 = vpack.c.bf16 %v90_v14, %v89_v13  ;;  %v106_v18 = vpack.c.bf16 %v98_v16, %v97_v15 }
  0x17   :  { %333 = vmatpush3.bf16.msra.mxu0 %v375_v27  ;;  %367 = vmatpush3.bf16.msra.mxu1 %v375_v27 }
  0x18   :  { %334 = vmatprep.subr.bf16.mxu0 %v376_v42  ;;  %360 = vmatprep.subr.bf16.mxu1 %v376_v42 }
  0x1b   :  { %335 = vmatpush3.bf16.msra.mxu0 %v376_v42  ;;  %368 = vmatpush3.bf16.msra.mxu1 %v376_v42 }
  0x1c   :  { %336 = vmatprep.subr.bf16.mxu0 %v377_v55  ;;  %361 = vmatprep.subr.bf16.mxu1 %v377_v55 }
  0x1f   :  { %337 = vmatpush3.bf16.msra.mxu0 %v377_v55  ;;  %369 = vmatpush3.bf16.msra.mxu1 %v377_v55 }
  0x22   :  { %339 = vmatmul.mubr.bf16.vlgmr.msra.gmra.mxu0 %v100_v4  ;;  %347 = vmatmul.mubr.bf16.vlgmr.msra.gmra.mxu1 %v104_v5 }
  0x23   :  { %342 = vmatprep.mubr.bf16.mxu0 %v101_v6  ;;  %350 = vmatprep.mubr.bf16.mxu1 %v105_v12 }
  0x2a   :  { %343 = vmatmul.mubr.bf16.gmra.mxu0 %v102_v17  ;;  %351 = vmatmul.mubr.bf16.gmra.mxu1 %v106_v18 }
  0xe2   :  { %v340_v19 = vpop.f32.mrf.mxu0  ;;  %v348_v20 = vpop.f32.mrf.mxu1 }
  0xe3   :  { %v221_v21 = vadd.f32 %v340_v19, %v297_v9  ;;  %v253_v22 = vadd.f32 %v348_v20, %v297_v9 }
  0xe4   :  { %v212_v23 = vpop.f32.mrf.mxu0  ;;  %v244_v24 = vpop.f32.mrf.mxu1 }
  0xe5   :  { %277 = vst [vmem:[%s578_s5 + $0x10] sm:$0xff] %v221_v21  ;;  %285 = vst [vmem:[%s578_s5 + $0x50] sm:$0xff] %v253_v22  ;;  %v213_v25 = vadd.f32 %v297_v9, %v212_v23  ;;  %v245_v26 = vadd.f32 %v297_v9, %v244_v24 }
  0xe6   :  { %v341_v27 = vpop.f32.mrf.mxu0  ;;  %v349_v28 = vpop.f32.mrf.mxu1 }
  0xe7   :  { %275 = vst [vmem:[%s578_s5] sm:$0xff] %v213_v25  ;;  %283 = vst [vmem:[%s578_s5 + $0x40] sm:$0xff] %v245_v26  ;;  %v224_v29 = vadd.f32 %v341_v27, %v297_v9  ;;  %v256_v30 = vadd.f32 %v349_v28, %v297_v9 }
  0xe8   :  { %v215_v31 = vpop.f32.mrf.mxu0  ;;  %v247_v32 = vpop.f32.mrf.mxu1 }
  0xe9   :  { %278 = vst [vmem:[%s578_s5 + $0x18] sm:$0xff] %v224_v29  ;;  %286 = vst [vmem:[%s578_s5 + $0x58] sm:$0xff] %v256_v30  ;;  %v216_v33 = vadd.f32 %v297_v9, %v215_v31  ;;  %v248_v34 = vadd.f32 %v297_v9, %v247_v32 }
  0xea   :  { %v344_v35 = vpop.f32.mrf.mxu0  ;;  %v352_v36 = vpop.f32.mrf.mxu1 }
  0xeb   :  { %276 = vst [vmem:[%s578_s5 + $0x8] sm:$0xff] %v216_v33  ;;  %284 = vst [vmem:[%s578_s5 + $0x48] sm:$0xff] %v248_v34  ;;  %v237_v37 = vadd.f32 %v344_v35, %v297_v9  ;;  %v269_v38 = vadd.f32 %v352_v36, %v297_v9 }
  0xec   :  { %v228_v39 = vpop.f32.mrf.mxu0  ;;  %v260_v40 = vpop.f32.mrf.mxu1 }
  0xed   :  { %281 = vst [vmem:[%s578_s5 + $0x30] sm:$0xff] %v237_v37  ;;  %289 = vst [vmem:[%s578_s5 + $0x70] sm:$0xff] %v269_v38  ;;  %v229_v41 = vadd.f32 %v297_v9, %v228_v39  ;;  %v261_v42 = vadd.f32 %v297_v9, %v260_v40 }
  0xee   :  { %v345_v43 = vpop.f32.mrf.mxu0  ;;  %v353_v44 = vpop.f32.mrf.mxu1 }
  0xef   :  { %279 = vst [vmem:[%s578_s5 + $0x20] sm:$0xff] %v229_v41  ;;  %287 = vst [vmem:[%s578_s5 + $0x60] sm:$0xff] %v261_v42  ;;  %v240_v45 = vadd.f32 %v345_v43, %v297_v9  ;;  %v272_v46 = vadd.f32 %v353_v44, %v297_v9 }
  0xf0   :  { %v231_v47 = vpop.f32.mrf.mxu0  ;;  %v263_v48 = vpop.f32.mrf.mxu1 }
  0xf1   :  { %282 = vst [vmem:[%s578_s5 + $0x38] sm:$0xff] %v240_v45  ;;  %290 = vst [vmem:[%s578_s5 + $0x78] sm:$0xff] %v272_v46  ;;  %v232_v49 = vadd.f32 %v297_v9, %v231_v47  ;;  %v264_v50 = vadd.f32 %v297_v9, %v263_v48 }
  0xf3   :  { %280 = vst [vmem:[%s578_s5 + $0x28] sm:$0xff] %v232_v49  ;;  %288 = vst [vmem:[%s578_s5 + $0x68] sm:$0xff] %v264_v50 }

// kernel: preact_bottleneck.11
= control target key start
LH: loop header
LB: loop body
LE: loop exit
PB: predicated region body
PF: predicated region fallthrough
CT: control target
= control target key end

     0   :  { %s961_s0 = inlined_call_operand.vmem [shape: f32[128,128], index: 0, kind: input, shape index: {}]   ;;  %s962_s1 = inlined_call_operand.vmem [shape: f32[1,128], index: 1, kind: input, shape index: {}]   ;;  %s963_s2 = inlined_call_operand.vmem [shape: f32[1,128], index: 2, kind: input, shape index: {}]   ;;  %s964_s3 = inlined_call_operand.vmem [shape: bf16[128,128], index: 3, kind: input, shape index: {}]   ;;  %s965_s4 = inlined_call_operand.vmem [shape: f32[1,128], index: 4, kind: input, shape index: {}]   ;;  %s966_s5 = inlined_call_operand.vmem [shape: f32[128,128], index: 5, kind: input, shape index: {}]   ;;  %s967_s6 = inlined_call_operand.vmem [shape: bf16[128,128], index: 6, kind: input, shape index: {}]   ;;  %s968_s7 = inlined_call_operand.vmem [shape: f32[1,128], index: 7, kind: input, shape index: {}]   ;;  %s969_s8 = inlined_call_operand.hbm [shape: f32[128,128], index: 8, kind: output, shape index: {}]  }
   0x1   :  { %v644_v0 = vld [vmem:[%s964_s3 + $0x38] sm:$0xff]   ;;  %v646_v2 = vld [vmem:[%s964_s3 + $0x30] sm:$0xff]   ;;  %v648_v4 = vld [vmem:[%s964_s3 + $0x28] sm:$0xff]  }
   0x2   :  { %v645_v1 = vld [vmem:[%s967_s6 + $0x38] sm:$0xff]   ;;  %577 = vmatprep.subr.bf16.mxu0 %v644_v0  ;;  %v647_v3 = vld [vmem:[%s967_s6 + $0x30] sm:$0xff]   ;;  %v649_v5 = vld [vmem:[%s967_s6 + $0x28] sm:$0xff]  }
   0x3   :  { %609 = vmatprep.subr.bf16.mxu1 %v645_v1  ;;  %578 = vmatpush3.bf16.msra.mxu0 %v644_v0  ;;  %v650_v6 = vld [vmem:[%s964_s3 + $0x20] sm:$0xff]   ;;  %v652_v8 = vld [vmem:[%s964_s3 + $0x18] sm:$0xff]   ;;  %v654_v10 = vld [vmem:[%s964_s3 + $0x10] sm:$0xff]  }
   0x4   :  { %610 = vmatpush3.bf16.msra.mxu1 %v645_v1  ;;  %579 = vmatprep.subr.bf16.mxu0 %v646_v2  ;;  %v651_v7 = vld [vmem:[%s967_s6 + $0x20] sm:$0xff]   ;;  %v653_v9 = vld [vmem:[%s967_s6 + $0x18] sm:$0xff]   ;;  %v655_v11 = vld [vmem:[%s967_s6 + $0x10] sm:$0xff]  }
   0x5   :  { %611 = vmatprep.subr.bf16.mxu1 %v647_v3  ;;  %v31_v12 = vld [vmem:[%s961_s0] sm:$0xff]  ;;  %v32_v13 = vld [vmem:[%s961_s0 + $0x8] sm:$0xff]  ;;  %v33_v21 = vld [vmem:[%s961_s0 + $0x10] sm:$0xff] }
   0x6   :  { %v775_v14 = vld [vmem:[%s962_s1] ss:$0 sm:$0xff]  ;;  %v286_v19 = vld [vmem:[%s966_s5 + $0x8] sm:$0xff]  ;;  %v34_v22 = vld [vmem:[%s961_s0 + $0x18] sm:$0xff] }
   0x7   :  { %580 = vmatpush3.bf16.msra.mxu0 %v646_v2  ;;  %v54_v15 = vmul.f32 %v775_v14, %v31_v12  ;;  %v55_v16 = vmul.f32 %v775_v14, %v32_v13  ;;  %v782_v17 = vld [vmem:[%s963_s2] ss:$0 sm:$0xff]  ;;  %v56_v25 = vmul.f32 %v775_v14, %v33_v21  ;;  %v57_v26 = vmul.f32 %v775_v14, %v34_v22  ;;  %v36_v28 = vld [vmem:[%s961_s0 + $0x28] sm:$0xff]  ;;  %v37_v40 = vld [vmem:[%s961_s0 + $0x30] sm:$0xff] }
   0x8   :  { %612 = vmatpush3.bf16.msra.mxu1 %v647_v3  ;;  %581 = vmatprep.subr.bf16.mxu0 %v648_v4  ;;  %v285_v18 = vld [vmem:[%s966_s5] sm:$0xff]  ;;  %v656_v29 = vld [vmem:[%s964_s3 + $0x8] sm:$0xff]   ;;  %v59_v31 = vmul.f32 %v775_v14, %v36_v28  ;;  %v38_v41 = vld [vmem:[%s961_s0 + $0x38] sm:$0xff]  ;;  %v60_v48 = vmul.f32 %v775_v14, %v37_v40 }
   0x9   :  { %613 = vmatprep.subr.bf16.mxu1 %v649_v5  ;;  %v301_v20 = vpack.c.bf16 %v286_v19, %v285_v18  ;;  %v77_v23 = vadd.f32 %v782_v17, %v54_v15  ;;  %v78_v24 = vadd.f32 %v782_v17, %v55_v16  ;;  %v35_v27 = vld [vmem:[%s961_s0 + $0x20] sm:$0xff]  ;;  %v657_v32 = vld [vmem:[%s967_s6 + $0x8] sm:$0xff]   ;;  %v79_v35 = vadd.f32 %v782_v17, %v56_v25 }
   0xa   :  { %v58_v30 = vmul.f32 %v775_v14, %v35_v27  ;;  %v80_v36 = vadd.f32 %v782_v17, %v57_v26  ;;  %v82_v39 = vadd.f32 %v782_v17, %v59_v31  ;;  %v658_v42 = vld [vmem:[%s964_s3] sm:$0xff]   ;;  %v40_v44 = vld [vmem:[%s961_s0 + $0x48] sm:$0xff]  ;;  %v61_v49 = vmul.f32 %v775_v14, %v38_v41 }
   0xb   :  { %582 = vmatpush3.bf16.msra.mxu0 %v648_v4  ;;  %v93_v33 = vmax.f32 %v77_v23, 0.0  ;;  %v94_v34 = vmax.f32 %v78_v24, 0.0  ;;  %625 = vmatprep.mubr.bf16.mxu1 %v301_v20  ;;  %v39_v43 = vld [vmem:[%s961_s0 + $0x40] sm:$0xff]  ;;  %v95_v46 = vmax.f32 %v79_v35, 0.0  ;;  %v63_v53 = vmul.f32 %v775_v14, %v40_v44 }
   0xc   :  { %614 = vmatpush3.bf16.msra.mxu1 %v649_v5  ;;  %583 = vmatprep.subr.bf16.mxu0 %v650_v6  ;;  %v81_v38 = vadd.f32 %v782_v17, %v58_v30  ;;  %v659_v45 = vld [vmem:[%s967_s6] sm:$0xff]   ;;  %v96_v47 = vmax.f32 %v80_v36, 0.0  ;;  %v98_v51 = vmax.f32 %v82_v39, 0.0  ;;  %v62_v52 = vmul.f32 %v775_v14, %v39_v43 }
   0xd   :  { %615 = vmatprep.subr.bf16.mxu1 %v651_v7  ;;  %v109_v37 = vpack.c.bf16 %v94_v34, %v93_v33 }
   0xe   :  { %v97_v50 = vmax.f32 %v81_v38, 0.0 }
   0xf   :  { %584 = vmatpush3.bf16.msra.mxu0 %v650_v6  ;;  %593 = vmatprep.mubr.bf16.mxu0 %v109_v37 }
  0x10   :  { %616 = vmatpush3.bf16.msra.mxu1 %v651_v7  ;;  %585 = vmatprep.subr.bf16.mxu0 %v652_v8 }
  0x11   :  { %617 = vmatprep.subr.bf16.mxu1 %v653_v9 }
  0x13   :  { %586 = vmatpush3.bf16.msra.mxu0 %v652_v8 }
  0x14   :  { %618 = vmatpush3.bf16.msra.mxu1 %v653_v9  ;;  %587 = vmatprep.subr.bf16.mxu0 %v654_v10 }
  0x15   :  { %619 = vmatprep.subr.bf16.mxu1 %v655_v11 }
  0x17   :  { %588 = vmatpush3.bf16.msra.mxu0 %v654_v10 }
  0x18   :  { %620 = vmatpush3.bf16.msra.mxu1 %v655_v11  ;;  %589 = vmatprep.subr.bf16.mxu0 %v656_v29 }
  0x19   :  { %621 = vmatprep.subr.bf16.mxu1 %v657_v32 }
  0x1b   :  { %590 = vmatpush3.bf16.msra.mxu0 %v656_v29 }
  0x1c   :  { %13 = vsyncpa [#allocation3], 0  ;;  %622 = vmatpush3.bf16.msra.mxu1 %v657_v32  ;;  %591 = vmatprep.subr.bf16.mxu0 %v658_v42  ;;  %v287_v54 = vld [vmem:[%s966_s5 + $0x10] sm:$0xff]  ;;  %v288_v55 = vld [vmem:[%s966_s5 + $0x18] sm:$0xff]  ;;  %v110_v58 = vpack.c.bf16 %v96_v47, %v95_v46  ;;  %v83_v59 = vadd.f32 %v782_v17, %v60_v48  ;;  %v84_v60 = vadd.f32 %v782_v17, %v61_v49 }
  0x1d   :  { %623 = vmatprep.subr.bf16.mxu1 %v659_v45  ;;  %v289_v56 = vld [vmem:[%s966_s5 + $0x20] sm:$0xff]  ;;  %v290_v57 = vld [vmem:[%s966_s5 + $0x28] sm:$0xff]  ;;  %v302_v61 = vpack.c.bf16 %v288_v55, %v287_v54  ;;  %v111_v62 = vpack.c.bf16 %v98_v51, %v97_v50  ;;  %v85_v63 = vadd.f32 %v782_v17, %v62_v52  ;;  %v86_v0 = vadd.f32 %v782_v17, %v63_v53  ;;  %v41_v1 = vld [vmem:[%s961_s0 + $0x50] sm:$0xff] }
  0x1e   :  { %v42_v2 = vld [vmem:[%s961_s0 + $0x58] sm:$0xff]  ;;  %v303_v3 = vpack.c.bf16 %v290_v57, %v289_v56  ;;  %v43_v4 = vld [vmem:[%s961_s0 + $0x60] sm:$0xff]  ;;  %v44_v5 = vld [vmem:[%s961_s0 + $0x68] sm:$0xff]  ;;  %v99_v6 = vmax.f32 %v83_v59, 0.0  ;;  %v100_v7 = vmax.f32 %v84_v60, 0.0  ;;  %v64_v8 = vmul.f32 %v775_v14, %v41_v1 }
  0x1f   :  { %592 = vmatpush3.bf16.msra.mxu0 %v658_v42  ;;  %v65_v9 = vmul.f32 %v775_v14, %v42_v2  ;;  %v101_v10 = vmax.f32 %v85_v63, 0.0  ;;  %v102_v11 = vmax.f32 %v86_v0, 0.0  ;;  %v66_v12 = vmul.f32 %v775_v14, %v43_v4  ;;  %v291_v15 = vld [vmem:[%s966_s5 + $0x30] sm:$0xff]  ;;  %v292_v16 = vld [vmem:[%s966_s5 + $0x38] sm:$0xff]  ;;  %v293_v18 = vld [vmem:[%s966_s5 + $0x40] sm:$0xff] }
  0x20   :  { %624 = vmatpush3.bf16.msra.mxu1 %v659_v45  ;;  %v67_v13 = vmul.f32 %v775_v14, %v44_v5  ;;  %v294_v19 = vld [vmem:[%s966_s5 + $0x48] sm:$0xff]  ;;  %v112_v20 = vpack.c.bf16 %v100_v7, %v99_v6  ;;  %v87_v21 = vadd.f32 %v782_v17, %v64_v8  ;;  %v304_v23 = vpack.c.bf16 %v292_v16, %v291_v15  ;;  %v45_v27 = vld [vmem:[%s961_s0 + $0x70] sm:$0xff]  ;;  %v46_v28 = vld [vmem:[%s961_s0 + $0x78] sm:$0xff] }
  0x21   :  { %v88_v22 = vadd.f32 %v782_v17, %v65_v9  ;;  %v113_v24 = vpack.c.bf16 %v102_v11, %v101_v10  ;;  %v89_v25 = vadd.f32 %v782_v17, %v66_v12  ;;  %v305_v29 = vpack.c.bf16 %v294_v19, %v293_v18  ;;  %v295_v36 = vld [vmem:[%s966_s5 + $0x50] sm:$0xff]  ;;  %v296_v37 = vld [vmem:[%s966_s5 + $0x58] sm:$0xff]  ;;  %v297_v38 = vld [vmem:[%s966_s5 + $0x60] sm:$0xff] }
  0x22   :  { %594 = vmatmul.mubr.bf16.vlgmr.msra.gmra.mxu0 %v110_v58  ;;  %v90_v26 = vadd.f32 %v782_v17, %v67_v13  ;;  %v103_v30 = vmax.f32 %v87_v21, 0.0  ;;  %v68_v32 = vmul.f32 %v775_v14, %v45_v27  ;;  %v69_v33 = vmul.f32 %v775_v14, %v46_v28  ;;  %v298_v14 = vld [vmem:[%s966_s5 + $0x68] sm:$0xff]  ;;  %v299_v47 = vld [vmem:[%s966_s5 + $0x70] sm:$0xff]  ;;  %v300_v48 = vld [vmem:[%s966_s5 + $0x78] sm:$0xff] }
  0x23   :  { %626 = vmatmul.mubr.bf16.vlgmr.msra.gmra.mxu1 %v302_v61  ;;  %597 = vmatprep.mubr.bf16.mxu0 %v111_v62  ;;  %v104_v31 = vmax.f32 %v88_v22, 0.0  ;;  %v105_v34 = vmax.f32 %v89_v25, 0.0  ;;  %v306_v42 = vpack.c.bf16 %v296_v37, %v295_v36  ;;  %v307_v44 = vpack.c.bf16 %v298_v14, %v297_v38  ;;  %v924_v51 = vld [vmem:[%s968_s7] ss:$0 sm:$0xff] }
  0x24   :  { %629 = vmatprep.mubr.bf16.mxu1 %v303_v3  ;;  %v106_v35 = vmax.f32 %v90_v26, 0.0  ;;  %v91_v40 = vadd.f32 %v782_v17, %v68_v32  ;;  %v92_v41 = vadd.f32 %v782_v17, %v69_v33  ;;  %v308_v50 = vpack.c.bf16 %v300_v48, %v299_v47  ;;  %v919_v17 = vld [vmem:[%s965_s4] ss:$0 sm:$0xff]  ;;  %s682_s4 = smov [#allocation2]  }
  0x25   :  { %v114_v39 = vpack.c.bf16 %v104_v31, %v103_v30  ;;  %s514_s5 = sshll.u32 %s682_s4, 4  ;;  %s515_s5 = int_to_ptr.vmem [resolvable:$true] %s514_s5 }
  0x26   :  { %v115_v43 = vpack.c.bf16 %v106_v35, %v105_v34  ;;  %v107_v45 = vmax.f32 %v91_v40, 0.0  ;;  %v108_v46 = vmax.f32 %v92_v41, 0.0  ;;  %s660_s7 = scalar_lea.vmem %s515_s5, 2048  ;;  %p665_p1 = scmp.lt.s32.totalorder %s515_s5, %s515_s5 }
  0x27   :  { %p661_p0 = scmp.ne.s32.totalorder %s515_s5, %s660_s7  ;;  %p666_p2 = scmp.lt.s32.totalorder %s660_s7, %s660_s7 }
  0x28   :  { %v116_v49 = vpack.c.bf16 %v108_v46, %v107_v45 }
  0x29   :  { %p667_p3 = por %p666_p2, %p665_p1 }
  0x2a   :  { %598 = vmatmul.mubr.bf16.gmra.mxu0 %v112_v20 }
  0x2b   :  { %630 = vmatmul.mubr.bf16.gmra.mxu1 %v304_v23  ;;  %601 = vmatprep.mubr.bf16.mxu0 %v113_v24  ;;  %p668_p4 = pnand %p667_p3, %p661_p0 }
  0x2c   :  { %633 = vmatprep.mubr.bf16.mxu1 %v305_v29 }
  0x32   :  { %602 = vmatmul.mubr.bf16.gmra.mxu0 %v114_v39 }
  0x33   :  { %634 = vmatmul.mubr.bf16.gmra.mxu1 %v306_v42  ;;  %605 = vmatprep.mubr.bf16.mxu0 %v115_v43 }
  0x34   :  { %637 = vmatprep.mubr.bf16.mxu1 %v307_v44 }
  0x3a   :  { %606 = vmatmul.mubr.bf16.gmra.mxu0 %v116_v49 }
  0x3b   :  { %638 = vmatmul.mubr.bf16.gmra.mxu1 %v308_v50 }
  0xe2   :  { %v595_v52 = vpop.f32.mrf.mxu0 }
  0xe3   :  { %v231_v53 = vadd.f32 %v595_v52, %v919_v17  ;;  %v627_v54 = vpop.f32.mrf.mxu1 }
  0xe4   :  { %v423_v55 = vadd.f32 %v627_v54, %v924_v51  ;;  %v222_v56 = vpop.f32.mrf.mxu0 }
  0xe5   :  { %v223_v57 = vadd.f32 %v919_v17, %v222_v56  ;;  %v414_v58 = vpop.f32.mrf.mxu1 }
  0xe6   :  { %v479_v59 = vadd.f32 %v423_v55, %v231_v53  ;;  %v415_v60 = vadd.f32 %v924_v51, %v414_v58  ;;  %v596_v61 = vpop.f32.mrf.mxu0 }
  0xe7   :  { %v234_v62 = vadd.f32 %v596_v61, %v919_v17  ;;  %v628_v63 = vpop.f32.mrf.mxu1 }
  0xe8   :  { %495 = vst [vmem:[#allocation2 + $0x10] sm:$0xff] %v479_v59  ;;  %v477_v0 = vadd.f32 %v415_v60, %v223_v57  ;;  %v426_v1 = vadd.f32 %v628_v63, %v924_v51  ;;  %v225_v2 = vpop.f32.mrf.mxu0 }
  0xe9   :  { %v226_v3 = vadd.f32 %v919_v17, %v225_v2  ;;  %v417_v4 = vpop.f32.mrf.mxu1 }
  0xea   :  { %493 = vst [vmem:[#allocation2] sm:$0xff] %v477_v0  ;;  %v480_v5 = vadd.f32 %v426_v1, %v234_v62  ;;  %v418_v6 = vadd.f32 %v924_v51, %v417_v4  ;;  %v599_v7 = vpop.f32.mrf.mxu0 }
  0xeb   :  { %v247_v8 = vadd.f32 %v599_v7, %v919_v17  ;;  %v631_v9 = vpop.f32.mrf.mxu1 }
  0xec   :  { %496 = vst [vmem:[#allocation2 + $0x18] sm:$0xff] %v480_v5  ;;  %v478_v10 = vadd.f32 %v418_v6, %v226_v3  ;;  %v439_v11 = vadd.f32 %v631_v9, %v924_v51  ;;  %v238_v12 = vpop.f32.mrf.mxu0 }
  0xed   :  { %v239_v13 = vadd.f32 %v919_v17, %v238_v12  ;;  %v430_v15 = vpop.f32.mrf.mxu1 }
  0xee   :  { %494 = vst [vmem:[#allocation2 + $0x8] sm:$0xff] %v478_v10  ;;  %v483_v16 = vadd.f32 %v439_v11, %v247_v8  ;;  %v431_v18 = vadd.f32 %v924_v51, %v430_v15  ;;  %v600_v19 = vpop.f32.mrf.mxu0 }
  0xef   :  { %v250_v20 = vadd.f32 %v600_v19, %v919_v17  ;;  %v632_v21 = vpop.f32.mrf.mxu1 }
  0xf0   :  { %499 = vst [vmem:[#allocation2 + $0x30] sm:$0xff] %v483_v16  ;;  %v481_v22 = vadd.f32 %v431_v18, %v239_v13  ;;  %v442_v23 = vadd.f32 %v632_v21, %v924_v51  ;;  %v241_v24 = vpop.f32.mrf.mxu0 }
  0xf1   :  { %v242_v25 = vadd.f32 %v919_v17, %v241_v24  ;;  %v433_v26 = vpop.f32.mrf.mxu1 }
  0xf2   :  { %497 = vst [vmem:[#allocation2 + $0x20] sm:$0xff] %v481_v22  ;;  %v484_v27 = vadd.f32 %v442_v23, %v250_v20  ;;  %v434_v28 = vadd.f32 %v924_v51, %v433_v26  ;;  %v603_v29 = vpop.f32.mrf.mxu0 }
  0xf3   :  { %v263_v30 = vadd.f32 %v603_v29, %v919_v17  ;;  %v635_v31 = vpop.f32.mrf.mxu1 }
  0xf4   :  { %500 = vst [vmem:[#allocation2 + $0x38] sm:$0xff] %v484_v27  ;;  %v482_v32 = vadd.f32 %v434_v28, %v242_v25  ;;  %v455_v33 = vadd.f32 %v635_v31, %v924_v51  ;;  %v254_v34 = vpop.f32.mrf.mxu0 }
  0xf5   :  { %v255_v35 = vadd.f32 %v919_v17, %v254_v34  ;;  %v446_v36 = vpop.f32.mrf.mxu1 }
  0xf6   :  { %498 = vst [vmem:[#allocation2 + $0x28] sm:$0xff] %v482_v32  ;;  %v487_v37 = vadd.f32 %v455_v33, %v263_v30  ;;  %v447_v38 = vadd.f32 %v924_v51, %v446_v36  ;;  %v604_v14 = vpop.f32.mrf.mxu0 }
  0xf7   :  { %v266_v39 = vadd.f32 %v604_v14, %v919_v17  ;;  %v636_v40 = vpop.f32.mrf.mxu1 }
  0xf8   :  { %503 = vst [vmem:[#allocation2 + $0x50] sm:$0xff] %v487_v37  ;;  %v485_v41 = vadd.f32 %v447_v38, %v255_v35  ;;  %v458_v42 = vadd.f32 %v636_v40, %v924_v51  ;;  %v257_v43 = vpop.f32.mrf.mxu0 }
  0xf9   :  { %v258_v44 = vadd.f32 %v919_v17, %v257_v43  ;;  %v449_v45 = vpop.f32.mrf.mxu1 }
  0xfa   :  { %501 = vst [vmem:[#allocation2 + $0x40] sm:$0xff] %v485_v41  ;;  %v488_v46 = vadd.f32 %v458_v42, %v266_v39  ;;  %v450_v47 = vadd.f32 %v924_v51, %v449_v45  ;;  %v607_v48 = vpop.f32.mrf.mxu0 }
  0xfb   :  { %v279_v49 = vadd.f32 %v607_v48, %v919_v17  ;;  %v639_v50 = vpop.f32.mrf.mxu1 }
  0xfc   :  { %504 = vst [vmem:[#allocation2 + $0x58] sm:$0xff] %v488_v46  ;;  %v486_v52 = vadd.f32 %v450_v47, %v258_v44  ;;  %v471_v53 = vadd.f32 %v639_v50, %v924_v51  ;;  %v270_v54 = vpop.f32.mrf.mxu0 }
  0xfd   :  { %v271_v55 = vadd.f32 %v919_v17, %v270_v54  ;;  %v462_v56 = vpop.f32.mrf.mxu1 }
  0xfe   :  { %502 = vst [vmem:[#allocation2 + $0x48] sm:$0xff] %v486_v52  ;;  %v491_v57 = vadd.f32 %v471_v53, %v279_v49  ;;  %v463_v58 = vadd.f32 %v924_v51, %v462_v56  ;;  %v608_v59 = vpop.f32.mrf.mxu0 }
  0xff   :  { %v282_v60 = vadd.f32 %v608_v59, %v919_v17  ;;  %v640_v61 = vpop.f32.mrf.mxu1 }
 0x100   :  { %507 = vst [vmem:[#allocation2 + $0x70] sm:$0xff] %v491_v57  ;;  %v489_v62 = vadd.f32 %v463_v58, %v271_v55  ;;  %v474_v63 = vadd.f32 %v640_v61, %v924_v51  ;;  %v273_v0 = vpop.f32.mrf.mxu0 }
 0x101   :  { %v274_v1 = vadd.f32 %v919_v17, %v273_v0  ;;  %v465_v2 = vpop.f32.mrf.mxu1 }
 0x102   :  { %505 = vst [vmem:[#allocation2 + $0x60] sm:$0xff] %v489_v62  ;;  %v492_v3 = vadd.f32 %v474_v63, %v282_v60  ;;  %v466_v4 = vadd.f32 %v924_v51, %v465_v2 }
 0x104   :  { %508 = vst [vmem:[#allocation2 + $0x78] sm:$0xff] %v492_v3  ;;  %v490_v5 = vadd.f32 %v466_v4, %v274_v1 }
 0x106   :  { %506 = vst [vmem:[#allocation2 + $0x68] sm:$0xff] %v490_v5 }
 0x107   :  { %671 = shalt.err (!%p668_p4)
}
 0x108   :  { %s683_s10 = smov 128   ;;  %s684_s11 = smov 8  }
 0x109   :  { %520 = dma.vmem_to_hbm [thread:$0]  %s515_s5, 2048, %s969_s8, [#allocation3], %s683_s10, %s683_s10, %s684_s11  }
 0x10a   :  { %680 = dma.done.wait [#allocation3], 2048  }
 0x10b   :  { %681 = vsyncadd [#allocation3], 4294965248 }
 0x10c   :  { %524 = vsyncpa [#allocation3], 1 }

// kernel: preact_bottleneck.9
= control target key start
LH: loop header
LB: loop body
LE: loop exit
PB: predicated region body
PF: predicated region fallthrough
CT: control target
= control target key end

     0   :  { %s2398_s18 = smov 0   ;;  %s2917_s0 = inlined_call_operand.vmem [shape: f32[2,8,8,128], index: 0, kind: input, shape index: {}]   ;;  %s2918_s1 = inlined_call_operand.vmem [shape: f32[1,128], index: 1, kind: input, shape index: {}]   ;;  %s2919_s2 = inlined_call_operand.vmem [shape: f32[1,128], index: 2, kind: input, shape index: {}]   ;;  %s2920_s3 = inlined_call_operand.vmem [shape: bf16[9,128,128], index: 3, kind: input, shape index: {}]   ;;  %s2921_s4 = inlined_call_operand.vmem [shape: f32[1,128], index: 4, kind: input, shape index: {}]   ;;  %s2922_s5 = inlined_call_operand.vmem [shape: f32[2,8,8,128], index: 5, kind: output, shape index: {}]  }
   0x1 LB: > { %s1722_s19 = sadd.s32 4294967295, %s2365_s18   ;;  %p1726_p0 = scmp.ge.s32.totalorder %s2365_s18, 1  ;;  %s2365_s18 = sphi %s2398_s18, %s15_s18  }
   0x2   : > { %p187_p1 = scmp.lt.s32.totalorder %s2365_s18, 3 }
   0x4   : > { %p188_p2 = pnand %p1726_p0, %p187_p1 }
   0x6   : > { %191 = sbr.rel (%p188_p2) target bundleno = 375 (0x177), region = 40 }
   0xb   : > { %v2287_v0 = vld [vmem:[%s2920_s3 + $0x38] sm:$0xff]   ;;  %v2289_v2 = vld [vmem:[%s2920_s3 + $0x30] sm:$0xff]   ;;  %p2417_p3 = scmp.lt.s32.totalorder %s1722_s19, 1  ;;  %v2367_v3 = vmov 0.0   ;;  %v2291_v5 = vld [vmem:[%s2920_s3 + $0x28] sm:$0xff]  }
   0xc   : > { %v2288_v1 = vld [vmem:[%s2920_s3 + $0x78] sm:$0xff]   ;;  %2046 = vmatprep.subr.bf16.mxu0 %v2287_v0  ;;  %272 = vst [vmem:[#allocation2] sm:$0xff] %v2367_v3  ;;  %274 = vst [vmem:[#allocation2 + $0x10] sm:$0xff] %v2367_v3  ;;  %v2290_v4 = vld [vmem:[%s2920_s3 + $0x70] sm:$0xff]  }
   0xd   : > { %275 = vst [vmem:[#allocation2 + $0x18] sm:$0x3] %v2367_v3  ;;  %273 = vst [vmem:[#allocation2 + $0x8] sm:$0x3] %v2367_v3  ;;  %2070 = vmatprep.subr.bf16.mxu1 %v2288_v1  ;;  %2047 = vmatpush3.bf16.msra.mxu0 %v2287_v0  ;;  %v2292_v6 = vld [vmem:[%s2920_s3 + $0x68] sm:$0xff]   ;;  %s2939_s19 = smov (!%p2417_p3, %s1722_s19), 1 }
   0xe   : > { %276 = vst [vmem:[#allocation2 + $0x20] sm:$0xff] %v2367_v3  ;;  %277 = vst [vmem:[#allocation2 + $0x28] sm:$0x3] %v2367_v3  ;;  %2071 = vmatpush3.bf16.msra.mxu1 %v2288_v1  ;;  %2048 = vmatprep.subr.bf16.mxu0 %v2289_v2  ;;  %v2293_v7 = vld [vmem:[%s2920_s3 + $0x20] sm:$0xff]   ;;  %s1936_s12 = sshll.u32 %s2939_s19, 6  ;;  %v2295_v9 = vld [vmem:[%s2920_s3 + $0x18] sm:$0xff]  }
   0xf   : > { %278 = vst [vmem:[#allocation2 + $0x30] sm:$0xff] %v2367_v3  ;;  %279 = vst [vmem:[#allocation2 + $0x38] sm:$0x3] %v2367_v3  ;;  %2072 = vmatprep.subr.bf16.mxu1 %v2290_v4  ;;  %v2294_v8 = vld [vmem:[%s2920_s3 + $0x60] sm:$0xff]   ;;  %v2296_v10 = vld [vmem:[%s2920_s3 + $0x58] sm:$0xff]   ;;  %s2474_s21 = scalar_lea.vmem %s2917_s0, %s1936_s12  ;;  %s2901_s23 = scalar_lea.vmem %s2922_s5, %s1936_s12 }
  0x10   : > { %280 = vst [vmem:[#allocation2 + $0x40] sm:$0xff] %v2367_v3  ;;  %281 = vst [vmem:[#allocation2 + $0x48] sm:$0x3] %v2367_v3  ;;  %v2297_v11 = vld [vmem:[%s2920_s3 + $0x10] sm:$0xff]   ;;  %v226_v12 = vld [vmem:[%s2474_s21] sm:$0xff] }
  0x11   : > { %282 = vst [vmem:[#allocation2 + $0x50] sm:$0xff] %v2367_v3  ;;  %283 = vst [vmem:[#allocation2 + $0x58] sm:$0x3] %v2367_v3  ;;  %2049 = vmatpush3.bf16.msra.mxu0 %v2289_v2  ;;  %v2483_v13 = vld [vmem:[%s2918_s1] ss:$0 sm:$0xff]  ;;  %v2298_v15 = vld [vmem:[%s2920_s3 + $0x50] sm:$0xff]  }
  0x12   : > { %284 = vst [vmem:[#allocation2 + $0x60] sm:$0xff] %v2367_v3  ;;  %285 = vst [vmem:[#allocation2 + $0x68] sm:$0x3] %v2367_v3  ;;  %2073 = vmatpush3.bf16.msra.mxu1 %v2290_v4  ;;  %2050 = vmatprep.subr.bf16.mxu0 %v2291_v5  ;;  %v2488_v14 = vld [vmem:[%s2919_s2] ss:$0 sm:$0xff]  ;;  %v241_v16 = vmul.f32 %v2483_v13, %v226_v12  ;;  %v227_v17 = vld [vmem:[%s2474_s21 + $0x8] sm:$0xff] }
  0x13   : > { %286 = vst [vmem:[#allocation2 + $0x70] sm:$0xff] %v2367_v3  ;;  %287 = vst [vmem:[#allocation2 + $0x78] sm:$0x3] %v2367_v3  ;;  %2074 = vmatprep.subr.bf16.mxu1 %v2292_v6  ;;  %v228_v18 = vld [vmem:[%s2474_s21 + $0x10] sm:$0xff]  ;;  %v242_v19 = vmul.f32 %v2483_v13, %v227_v17  ;;  %v2299_v21 = vld [vmem:[%s2920_s3 + $0x8] sm:$0xff]  }
  0x14   : > { %288 = vst [vmem:[#allocation2 + $0x80] sm:$0xff] %v2367_v3  ;;  %289 = vst [vmem:[#allocation2 + $0x88] sm:$0x3] %v2367_v3  ;;  %v243_v20 = vmul.f32 %v2483_v13, %v228_v18  ;;  %v256_v22 = vadd.f32 %v2488_v14, %v241_v16  ;;  %v458_v23 = vld [vmem:[#allocation2 + $0x1] sm:$0xff]  ;;  %v229_v33 = vld [vmem:[%s2474_s21 + $0x18] sm:$0xff] }
  0x15   : > { %290 = vst [vmem:[#allocation2 + $0x90] sm:$0xff] %v2367_v3  ;;  %291 = vst [vmem:[#allocation2 + $0x98] sm:$0x3] %v2367_v3  ;;  %2051 = vmatpush3.bf16.msra.mxu0 %v2291_v5  ;;  %v257_v24 = vadd.f32 %v2488_v14, %v242_v19  ;;  %v2300_v26 = vld [vmem:[%s2920_s3 + $0x48] sm:$0xff]   ;;  %v2301_v31 = vld [vmem:[%s2920_s3] sm:$0xff]   ;;  %v244_v36 = vmul.f32 %v2483_v13, %v229_v33 }
  0x16   : > { %2075 = vmatpush3.bf16.msra.mxu1 %v2292_v6  ;;  %2052 = vmatprep.subr.bf16.mxu0 %v2293_v7  ;;  %v258_v25 = vadd.f32 %v2488_v14, %v243_v20  ;;  %v2507_v27 = vmax.f32 %v256_v22, 0.0  ;;  %v2302_v32 = vld [vmem:[%s2920_s3 + $0x40] sm:$0xff]   ;;  %v2303_v35 = vld [vmem:[%s2920_s3 + $0xb8] sm:$0xff]   ;;  %v231_v41 = vld [vmem:[%s2474_s21 + $0x28] sm:$0xff] }
  0x17   : > { %2076 = vmatprep.subr.bf16.mxu1 %v2294_v8  ;;  %v2509_v28 = vmax.f32 %v257_v24, 0.0  ;;  %v230_v34 = vld [vmem:[%s2474_s21 + $0x20] sm:$0xff]  ;;  %v2304_v38 = vld [vmem:[%s2920_s3 + $0xf8] sm:$0xff]   ;;  %v259_v39 = vadd.f32 %v2488_v14, %v244_v36  ;;  %v232_v42 = vld [vmem:[%s2474_s21 + $0x30] sm:$0xff]  ;;  %v246_v44 = vmul.f32 %v2483_v13, %v231_v41 }
  0x18   : > { %v2511_v29 = vmax.f32 %v258_v25, 0.0  ;;  %293 = vst [vmem:[#allocation2 + $0x11] sm:$0xff] %v2507_v27  ;;  %v466_v30 = vpack.c.bf16 %v2507_v27, %v458_v23  ;;  %v245_v37 = vmul.f32 %v2483_v13, %v230_v34  ;;  %v247_v45 = vmul.f32 %v2483_v13, %v232_v42  ;;  %v2305_v53 = vld [vmem:[%s2920_s3 + $0xb0] sm:$0xff]   ;;  %v2307_v61 = vld [vmem:[%s2920_s3 + $0xa8] sm:$0xff]   ;;  %v2309_v0 = vld [vmem:[%s2920_s3 + $0xa0] sm:$0xff]  }
  0x19   : > { %2053 = vmatpush3.bf16.msra.mxu0 %v2293_v7  ;;  %294 = vst [vmem:[#allocation2 + $0x21] sm:$0xff] %v2509_v28  ;;  %v2549_v50 = vmax.f32 %v259_v39, 0.0  ;;  %v261_v54 = vadd.f32 %v2488_v14, %v246_v44  ;;  %v2306_v56 = vld [vmem:[%s2920_s3 + $0xf0] sm:$0xff]   ;;  %v2308_v63 = vld [vmem:[%s2920_s3 + $0xe8] sm:$0xff]   ;;  %v2310_v6 = vld [vmem:[%s2920_s3 + $0xe0] sm:$0xff]  }
  0x1a   : > { %2077 = vmatpush3.bf16.msra.mxu1 %v2294_v8  ;;  %2054 = vmatprep.subr.bf16.mxu0 %v2295_v9  ;;  %295 = vst [vmem:[#allocation2 + $0x31] sm:$0xff] %v2511_v29  ;;  %v260_v40 = vadd.f32 %v2488_v14, %v245_v37  ;;  %v2547_v49 = vpack.c.bf16 %v2511_v29, %v2509_v28  ;;  %v608_v1 = vld [vmem:[#allocation2 + $0x2] sm:$0xff]  ;;  %v2312_v17 = vld [vmem:[%s2920_s3 + $0xd8] sm:$0xff]   ;;  %v2313_v20 = vld [vmem:[%s2920_s3 + $0x90] sm:$0xff]  }
  0x1b   : > { %2078 = vmatprep.subr.bf16.mxu1 %v2296_v10  ;;  %2086 = vmatprep.mubr.bf16.mxu1 %v466_v30  ;;  %v262_v55 = vadd.f32 %v2488_v14, %v247_v45  ;;  %296 = vst [vmem:[#allocation2 + $0x41] sm:$0xff] %v2549_v50  ;;  %v917_v58 = vpack.c.bf16 %v2549_v50, %v2511_v29  ;;  %v2573_v59 = vmax.f32 %v261_v54, 0.0  ;;  %v233_v18 = vld [vmem:[%s2474_s21 + $0x38] sm:$0xff]  ;;  %v2316_v24 = vld [vmem:[%s2920_s3 + $0xc8] sm:$0xff]   ;;  %v2318_v25 = vld [vmem:[%s2920_s3 + $0xc0] sm:$0xff]  }
  0x1c   : > { %v2551_v51 = vmax.f32 %v260_v40, 0.0  ;;  %v248_v19 = vmul.f32 %v2483_v13, %v233_v18  ;;  %v2315_v13 = vld [vmem:[%s2920_s3 + $0x88] sm:$0xff]   ;;  %v2321_v37 = vld [vmem:[%s2920_s3 + $0x130] sm:$0xff]   ;;  %v916_v54 = vpack.c.bf16 %v2509_v28, %v2507_v27 }
  0x1d   : > { %2055 = vmatpush3.bf16.msra.mxu0 %v2295_v9  ;;  %v2575_v60 = vmax.f32 %v262_v55, 0.0  ;;  %298 = vst [vmem:[#allocation2 + $0x61] sm:$0xff] %v2573_v59  ;;  %v2324_v45 = vld [vmem:[%s2920_s3 + $0x168] sm:$0xff]   ;;  %v2329_v27 = vld [vmem:[%s2920_s3 + $0x110] sm:$0xff]  }
  0x1e   : > { %2079 = vmatpush3.bf16.msra.mxu1 %v2296_v10  ;;  %2056 = vmatprep.subr.bf16.mxu0 %v2297_v11  ;;  %297 = vst [vmem:[#allocation2 + $0x51] sm:$0xff] %v2551_v51  ;;  %v2568_v57 = vpack.c.bf16 %v2551_v51, %v2549_v50  ;;  %v918_v62 = vpack.c.bf16 %v2573_v59, %v2551_v51  ;;  %v2330_v28 = vld [vmem:[%s2920_s3 + $0x150] sm:$0xff]   ;;  %v2340_v29 = vld [vmem:[%s2920_s3 + $0x1e8] sm:$0xff]   ;;  %v2342_v51 = vld [vmem:[%s2920_s3 + $0x1e0] sm:$0xff]  }
  0x1f   : > { %2080 = vmatprep.subr.bf16.mxu1 %v2298_v15  ;;  %v2537_v43 = vld [vmem:[#allocation2 + $0x10] sm:$0xff]  ;;  %299 = vst [vmem:[#allocation2 + $0x71] sm:$0xff] %v2575_v60  ;;  %v2607_v8 = vpack.c.bf16 %v2575_v60, %v2573_v59  ;;  %v263_v22 = vadd.f32 %v2488_v14, %v248_v19  ;;  %v2317_v14 = vld [vmem:[%s2920_s3 + $0x80] sm:$0xff]   ;;  %v2343_v59 = vld [vmem:[%s2920_s3 + $0x198] sm:$0xff]  }
  0x20   : > { %v317_v46 = vpack.c.bf16 %v2537_v43, %v2367_v3  ;;  %v311_v47 = vld [vmem:[#allocation2 + $0x20] sm:$0xff]  ;;  %v2592_v2 = vld [vmem:[#allocation2 + $0x12] sm:$0xff] }
  0x21   : > { %2057 = vmatpush3.bf16.msra.mxu0 %v2297_v11  ;;  %v2543_v48 = vld [vmem:[#allocation2 + $0x30] sm:$0xff]  ;;  %v766_v9 = vpack.c.bf16 %v311_v47, %v2537_v43  ;;  %v616_v12 = vpack.c.bf16 %v2592_v2, %v608_v1  ;;  %v2637_v23 = vmax.f32 %v263_v22, 0.0  ;;  %v2323_v43 = vld [vmem:[%s2920_s3 + $0x128] sm:$0xff]   ;;  %v2333_v1 = vld [vmem:[%s2920_s3 + $0x100] sm:$0xff]  }
  0x22   : > { %2081 = vmatpush3.bf16.msra.mxu1 %v2298_v15  ;;  %2058 = vmatprep.subr.bf16.mxu0 %v2299_v21  ;;  %v2554_v52 = vpack.c.bf16 %v2543_v48, %v311_v47  ;;  %v2594_v4 = vld [vmem:[#allocation2 + $0x40] sm:$0xff]  ;;  %v2311_v15 = vld [vmem:[%s2920_s3 + $0x98] sm:$0xff]   ;;  %v2346_v18 = vld [vmem:[%s2920_s3 + $0x1d0] sm:$0xff]  }
  0x23   : > { %2082 = vmatprep.subr.bf16.mxu1 %v2300_v26  ;;  %2062 = vmatprep.mubr.bf16.mxu0 %v317_v46  ;;  %300 = vst [vmem:[#allocation2 + $0x81] sm:$0xff] %v2637_v23  ;;  %v2652_v30 = vld [vmem:[#allocation2 + $0x32] sm:$0xff]  ;;  %v2660_v33 = vld [vmem:[#allocation2 + $0x42] sm:$0xff]  ;;  %v767_v36 = vpack.c.bf16 %v2594_v4, %v2543_v48  ;;  %v919_v50 = vpack.c.bf16 %v2637_v23, %v2575_v60 }
  0x24   : > { %v2611_v10 = vld [vmem:[#allocation2 + $0x60] sm:$0xff]  ;;  %v2344_v60 = vld [vmem:[%s2920_s3 + $0x1d8] sm:$0xff]   ;;  %v2352_v22 = vld [vmem:[%s2920_s3 + $0x230] sm:$0xff]  }
  0x25   : > { %2059 = vmatpush3.bf16.msra.mxu0 %v2299_v21  ;;  %v2596_v5 = vld [vmem:[#allocation2 + $0x50] sm:$0xff]  ;;  %v2679_v40 = vld [vmem:[#allocation2 + $0x62] sm:$0xff] }
  0x26   : > { %2083 = vmatpush3.bf16.msra.mxu1 %v2300_v26  ;;  %2060 = vmatprep.subr.bf16.mxu0 %v2301_v31  ;;  %v2603_v7 = vpack.c.bf16 %v2596_v5, %v2594_v4  ;;  %v2613_v11 = vld [vmem:[#allocation2 + $0x70] sm:$0xff]  ;;  %v610_v26 = vld [vmem:[#allocation2 + $0x22] sm:$0xff]  ;;  %v768_v42 = vpack.c.bf16 %v2611_v10, %v2596_v5  ;;  %v2335_v4 = vld [vmem:[%s2920_s3 + $0x1b8] sm:$0xff]  }
  0x27   : > { %2084 = vmatprep.subr.bf16.mxu1 %v2302_v32  ;;  %v2621_v16 = vpack.c.bf16 %v2613_v11, %v2611_v10  ;;  %v2314_v21 = vld [vmem:[%s2920_s3 + $0xd0] sm:$0xff]   ;;  %v2663_v34 = vpack.c.bf16 %v2652_v30, %v610_v26  ;;  %v2325_v48 = vld [vmem:[%s2920_s3 + $0x120] sm:$0xff]   ;;  %v1066_v55 = vpack.c.bf16 %v610_v26, %v2592_v2  ;;  %v2336_v5 = vld [vmem:[%s2920_s3 + $0x1f8] sm:$0xff]  }
  0x28   : > { %v2682_v41 = vld [vmem:[#allocation2 + $0x72] sm:$0xff]  ;;  %v2334_v2 = vld [vmem:[%s2920_s3 + $0x140] sm:$0xff]  }
  0x29   : > { %2061 = vmatpush3.bf16.msra.mxu0 %v2301_v31  ;;  %v2319_v31 = vld [vmem:[%s2920_s3 + $0x138] sm:$0xff]   ;;  %v2697_v46 = vpack.c.bf16 %v2682_v41, %v2679_v40  ;;  %v2338_v10 = vld [vmem:[%s2920_s3 + $0x1f0] sm:$0xff]   ;;  %v2349_v19 = vld [vmem:[%s2920_s3 + $0x180] sm:$0xff]  }
  0x2a   : > { %2085 = vmatpush3.bf16.msra.mxu1 %v2302_v32  ;;  %2094 = vmatprep.subr.bf16.mxu0 %v2303_v35  ;;  %v2320_v32 = vld [vmem:[%s2920_s3 + $0x178] sm:$0xff]   ;;  %v2689_v44 = vld [vmem:[#allocation2 + $0x80] sm:$0xff] }
  0x2b   : > { %2118 = vmatprep.subr.bf16.mxu1 %v2304_v38  ;;  %v769_v47 = vpack.c.bf16 %v2689_v44, %v2613_v11 }
  0x2c   : > { %2063 = vmatmul.mubr.bf16.vlgmr.msra.gmra.mxu0 %v2554_v52 }
  0x2d   : > { %2087 = vmatmul.mubr.bf16.vlgmr.msra.gmra.mxu1 %v2547_v49  ;;  %2095 = vmatpush3.bf16.msra.mxu0 %v2303_v35  ;;  %v2665_v35 = vld [vmem:[#allocation2 + $0x52] sm:$0xff] }
  0x2e   : > { %2119 = vmatpush3.bf16.msra.mxu1 %v2304_v38  ;;  %2096 = vmatprep.subr.bf16.mxu0 %v2305_v53  ;;  %v2322_v38 = vld [vmem:[%s2920_s3 + $0x170] sm:$0xff]   ;;  %v2677_v39 = vpack.c.bf16 %v2665_v35, %v2660_v33  ;;  %v1068_v11 = vpack.c.bf16 %v2679_v40, %v2665_v35 }
  0x2f   : > { %2120 = vmatprep.subr.bf16.mxu1 %v2306_v56  ;;  %2090 = vmatprep.mubr.bf16.mxu1 %v2568_v57 }
  0x30   : > { %2066 = vmatprep.mubr.bf16.mxu0 %v2603_v7 }
  0x31   : > { %2097 = vmatpush3.bf16.msra.mxu0 %v2305_v53  ;;  %v2326_v53 = vld [vmem:[%s2920_s3 + $0x160] sm:$0xff]  }
  0x32   : > { %2121 = vmatpush3.bf16.msra.mxu1 %v2306_v56  ;;  %2098 = vmatprep.subr.bf16.mxu0 %v2307_v61  ;;  %v2327_v56 = vld [vmem:[%s2920_s3 + $0x118] sm:$0xff]  }
  0x33   : > { %2122 = vmatprep.subr.bf16.mxu1 %v2308_v63 }
  0x34   : > { %2067 = vmatmul.mubr.bf16.gmra.mxu0 %v2621_v16 }
  0x35   : > { %2099 = vmatpush3.bf16.msra.mxu0 %v2307_v61  ;;  %2091 = vmatmul.mubr.bf16.gmra.mxu1 %v2607_v8  ;;  %v2328_v61 = vld [vmem:[%s2920_s3 + $0x158] sm:$0xff]  }
  0x36   : > { %2123 = vmatpush3.bf16.msra.mxu1 %v2308_v63  ;;  %2100 = vmatprep.subr.bf16.mxu0 %v2309_v0  ;;  %v2331_v63 = vld [vmem:[%s2920_s3 + $0x108] sm:$0xff]  }
  0x37   : > { %2124 = vmatprep.subr.bf16.mxu1 %v2310_v6  ;;  %2134 = vmatprep.mubr.bf16.mxu1 %v766_v9  ;;  %v2337_v9 = vld [vmem:[%s2920_s3 + $0x1b0] sm:$0xff]  }
  0x38   : > { %2110 = vmatprep.mubr.bf16.mxu0 %v616_v12  ;;  %v2339_v12 = vld [vmem:[%s2920_s3 + $0x1a8] sm:$0xff]  }
  0x39   : > { %2101 = vmatpush3.bf16.msra.mxu0 %v2309_v0  ;;  %v2332_v0 = vld [vmem:[%s2920_s3 + $0x148] sm:$0xff]  }
  0x3a   : > { %2125 = vmatpush3.bf16.msra.mxu1 %v2310_v6  ;;  %2102 = vmatprep.subr.bf16.mxu0 %v2311_v15  ;;  %v1067_v6 = vpack.c.bf16 %v2660_v33, %v2652_v30 }
  0x3b   : > { %2126 = vmatprep.subr.bf16.mxu1 %v2312_v17 }
  0x3d   : > { %2103 = vmatpush3.bf16.msra.mxu0 %v2311_v15  ;;  %v2757_v15 = vld [vmem:[#allocation2 + $0x82] sm:$0xff] }
  0x3e   : > { %2127 = vmatpush3.bf16.msra.mxu1 %v2312_v17  ;;  %2104 = vmatprep.subr.bf16.mxu0 %v2313_v20  ;;  %v2341_v17 = vld [vmem:[%s2920_s3 + $0x1a0] sm:$0xff]  }
  0x3f   : > { %2128 = vmatprep.subr.bf16.mxu1 %v2314_v21 }
  0x41   : > { %2105 = vmatpush3.bf16.msra.mxu0 %v2313_v20  ;;  %v2350_v20 = vld [vmem:[%s2920_s3 + $0x1c0] sm:$0xff]  }
  0x42   : > { %2129 = vmatpush3.bf16.msra.mxu1 %v2314_v21  ;;  %2106 = vmatprep.subr.bf16.mxu0 %v2315_v13  ;;  %v2351_v21 = vld [vmem:[%s2920_s3 + $0x238] sm:$0xff]  }
  0x43   : > { %2130 = vmatprep.subr.bf16.mxu1 %v2316_v24 }
  0x45   : > { %2107 = vmatpush3.bf16.msra.mxu0 %v2315_v13  ;;  %v2353_v13 = vld [vmem:[%s2920_s3 + $0x228] sm:$0xff]  }
  0x46   : > { %2131 = vmatpush3.bf16.msra.mxu1 %v2316_v24  ;;  %2108 = vmatprep.subr.bf16.mxu0 %v2317_v14  ;;  %v1366_v24 = vld [vmem:[#allocation2 + $0x91] sm:$0xff] }
  0x47   : > { %2132 = vmatprep.subr.bf16.mxu1 %v2318_v25 }
  0x49   : > { %2109 = vmatpush3.bf16.msra.mxu0 %v2317_v14  ;;  %v1220_v14 = vpack.c.bf16 %v2367_v3, %v2689_v44  ;;  %v2355_v3 = vld [vmem:[%s2920_s3 + $0x218] sm:$0xff]  }
  0x4a   : > { %2133 = vmatpush3.bf16.msra.mxu1 %v2318_v25  ;;  %2142 = vmatprep.subr.bf16.mxu0 %v2319_v31  ;;  %v1516_v25 = vld [vmem:[#allocation2 + $0x92] sm:$0xff] }
  0x4b   : > { %2166 = vmatprep.subr.bf16.mxu1 %v2320_v32  ;;  %v1520_v26 = vpack.c.bf16 %v1516_v25, %v2757_v15 }
  0x4c   : > { %2111 = vmatmul.mubr.bf16.vlgmr.msra.gmra.mxu0 %v2663_v34 }
  0x4d   : > { %2135 = vmatmul.mubr.bf16.vlgmr.msra.gmra.mxu1 %v767_v36  ;;  %2143 = vmatpush3.bf16.msra.mxu0 %v2319_v31 }
  0x4e   : > { %2167 = vmatpush3.bf16.msra.mxu1 %v2320_v32  ;;  %2144 = vmatprep.subr.bf16.mxu0 %v2321_v37 }
  0x4f   : > { %2168 = vmatprep.subr.bf16.mxu1 %v2322_v38  ;;  %2114 = vmatprep.mubr.bf16.mxu0 %v2677_v39 }
  0x50   : > { %2138 = vmatprep.mubr.bf16.mxu1 %v768_v42 }
  0x51   : > { %2145 = vmatpush3.bf16.msra.mxu0 %v2321_v37 }
  0x52   : > { %2169 = vmatpush3.bf16.msra.mxu1 %v2322_v38  ;;  %2146 = vmatprep.subr.bf16.mxu0 %v2323_v43 }
  0x53   : > { %2170 = vmatprep.subr.bf16.mxu1 %v2324_v45 }
  0x54   : > { %2115 = vmatmul.mubr.bf16.gmra.mxu0 %v2697_v46 }
  0x55   : > { %2147 = vmatpush3.bf16.msra.mxu0 %v2323_v43  ;;  %2139 = vmatmul.mubr.bf16.gmra.mxu1 %v769_v47 }
  0x56   : > { %2171 = vmatpush3.bf16.msra.mxu1 %v2324_v45  ;;  %2148 = vmatprep.subr.bf16.mxu0 %v2325_v48 }
  0x57   : > { %2172 = vmatprep.subr.bf16.mxu1 %v2326_v53  ;;  %2158 = vmatprep.mubr.bf16.mxu0 %v916_v54 }
  0x58   : > { %2182 = vmatprep.mubr.bf16.mxu1 %v1066_v55 }
  0x59   : > { %2149 = vmatpush3.bf16.msra.mxu0 %v2325_v48 }
  0x5a   : > { %2173 = vmatpush3.bf16.msra.mxu1 %v2326_v53  ;;  %2150 = vmatprep.subr.bf16.mxu0 %v2327_v56 }
  0x5b   : > { %2174 = vmatprep.subr.bf16.mxu1 %v2328_v61 }
  0x5d   : > { %2151 = vmatpush3.bf16.msra.mxu0 %v2327_v56 }
  0x5e   : > { %2175 = vmatpush3.bf16.msra.mxu1 %v2328_v61  ;;  %2152 = vmatprep.subr.bf16.mxu0 %v2329_v27 }
  0x5f   : > { %2176 = vmatprep.subr.bf16.mxu1 %v2330_v28 }
  0x61   : > { %2153 = vmatpush3.bf16.msra.mxu0 %v2329_v27 }
  0x62   : > { %2177 = vmatpush3.bf16.msra.mxu1 %v2330_v28  ;;  %2154 = vmatprep.subr.bf16.mxu0 %v2331_v63 }
  0x63   : > { %2178 = vmatprep.subr.bf16.mxu1 %v2332_v0 }
  0x65   : > { %2155 = vmatpush3.bf16.msra.mxu0 %v2331_v63 }
  0x66   : > { %2179 = vmatpush3.bf16.msra.mxu1 %v2332_v0  ;;  %2156 = vmatprep.subr.bf16.mxu0 %v2333_v1 }
  0x67   : > { %2180 = vmatprep.subr.bf16.mxu1 %v2334_v2 }
  0x69   : > { %2157 = vmatpush3.bf16.msra.mxu0 %v2333_v1 }
  0x6a   : > { %2181 = vmatpush3.bf16.msra.mxu1 %v2334_v2  ;;  %2190 = vmatprep.subr.bf16.mxu0 %v2335_v4 }
  0x6b   : > { %2214 = vmatprep.subr.bf16.mxu1 %v2336_v5 }
  0x6c   : > { %2159 = vmatmul.mubr.bf16.vlgmr.msra.gmra.mxu0 %v917_v58  ;;  %v1069_v58 = vpack.c.bf16 %v2757_v15, %v2682_v41 }
  0x6d   : > { %2183 = vmatmul.mubr.bf16.vlgmr.msra.gmra.mxu1 %v1067_v6  ;;  %2191 = vmatpush3.bf16.msra.mxu0 %v2335_v4 }
  0x6e   : > { %2215 = vmatpush3.bf16.msra.mxu1 %v2336_v5  ;;  %2192 = vmatprep.subr.bf16.mxu0 %v2337_v9 }
  0x6f   : > { %2216 = vmatprep.subr.bf16.mxu1 %v2338_v10  ;;  %2162 = vmatprep.mubr.bf16.mxu0 %v918_v62  ;;  %v2345_v62 = vld [vmem:[%s2920_s3 + $0x190] sm:$0xff]  }
  0x70   : > { %2186 = vmatprep.mubr.bf16.mxu1 %v1068_v11 }
  0x71   : > { %2193 = vmatpush3.bf16.msra.mxu0 %v2337_v9 }
  0x72   : > { %2217 = vmatpush3.bf16.msra.mxu1 %v2338_v10  ;;  %2194 = vmatprep.subr.bf16.mxu0 %v2339_v12 }
  0x73   : > { %2218 = vmatprep.subr.bf16.mxu1 %v2340_v29 }
  0x74   : > { %2163 = vmatmul.mubr.bf16.gmra.mxu0 %v919_v50 }
  0x75   : > { %2195 = vmatpush3.bf16.msra.mxu0 %v2339_v12  ;;  %2187 = vmatmul.mubr.bf16.gmra.mxu1 %v1069_v58 }
  0x76   : > { %2219 = vmatpush3.bf16.msra.mxu1 %v2340_v29  ;;  %2196 = vmatprep.subr.bf16.mxu0 %v2341_v17 }
  0x77   : > { %2220 = vmatprep.subr.bf16.mxu1 %v2342_v51  ;;  %2206 = vmatprep.mubr.bf16.mxu0 %v2554_v52  ;;  %v2347_v52 = vld [vmem:[%s2920_s3 + $0x188] sm:$0xff]  }
  0x78   : > { %2230 = vmatprep.mubr.bf16.mxu1 %v2547_v49  ;;  %v2348_v49 = vld [vmem:[%s2920_s3 + $0x1c8] sm:$0xff]  }
  0x79   : > { %2197 = vmatpush3.bf16.msra.mxu0 %v2341_v17 }
  0x7a   : > { %2221 = vmatpush3.bf16.msra.mxu1 %v2342_v51  ;;  %2198 = vmatprep.subr.bf16.mxu0 %v2343_v59 }
  0x7b   : > { %2222 = vmatprep.subr.bf16.mxu1 %v2344_v60 }
  0x7d   : > { %2199 = vmatpush3.bf16.msra.mxu0 %v2343_v59 }
  0x7e   : > { %2223 = vmatpush3.bf16.msra.mxu1 %v2344_v60  ;;  %2200 = vmatprep.subr.bf16.mxu0 %v2345_v62 }
  0x7f   : > { %2224 = vmatprep.subr.bf16.mxu1 %v2346_v18 }
  0x81   : > { %2201 = vmatpush3.bf16.msra.mxu0 %v2345_v62 }
  0x82   : > { %2225 = vmatpush3.bf16.msra.mxu1 %v2346_v18  ;;  %2202 = vmatprep.subr.bf16.mxu0 %v2347_v52 }
  0x83   : > { %2226 = vmatprep.subr.bf16.mxu1 %v2348_v49 }
  0x85   : > { %2203 = vmatpush3.bf16.msra.mxu0 %v2347_v52 }
  0x86   : > { %2227 = vmatpush3.bf16.msra.mxu1 %v2348_v49  ;;  %2204 = vmatprep.subr.bf16.mxu0 %v2349_v19 }
  0x87   : > { %2228 = vmatprep.subr.bf16.mxu1 %v2350_v20 }
  0x89   : > { %2205 = vmatpush3.bf16.msra.mxu0 %v2349_v19 }
  0x8a   : > { %2229 = vmatpush3.bf16.msra.mxu1 %v2350_v20  ;;  %2238 = vmatprep.subr.bf16.mxu0 %v2351_v21  ;;  %v1733_v20 = vld [vmem:[%s2921_s4] ss:$0 sm:$0xff] }
  0x8b   : > { %2262 = vmatprep.subr.bf16.mxu1 %v2351_v21 }
  0x8c   : > { %2207 = vmatmul.mubr.bf16.vlgmr.msra.gmra.mxu0 %v2603_v7  ;;  %v1370_v7 = vpack.c.bf16 %v1366_v24, %v2637_v23  ;;  %v2358_v23 = vld [vmem:[%s2920_s3 + $0x200] sm:$0xff]  }
  0x8d   : > { %2231 = vmatmul.mubr.bf16.vlgmr.msra.gmra.mxu1 %v2568_v57  ;;  %2239 = vmatpush3.bf16.msra.mxu0 %v2351_v21  ;;  %v2354_v57 = vld [vmem:[%s2920_s3 + $0x220] sm:$0xff]  }
  0x8e   : > { %2270 = vmatpush3.bf16.msra.mxu1 %v2351_v21  ;;  %2240 = vmatprep.subr.bf16.mxu0 %v2352_v22 }
  0x8f   : > { %2263 = vmatprep.subr.bf16.mxu1 %v2352_v22  ;;  %2210 = vmatprep.mubr.bf16.mxu0 %v2621_v16  ;;  %v2357_v16 = vld [vmem:[%s2920_s3 + $0x208] sm:$0xff]  }
  0x90   : > { %2234 = vmatprep.mubr.bf16.mxu1 %v2607_v8  ;;  %v2356_v8 = vld [vmem:[%s2920_s3 + $0x210] sm:$0xff]  }
  0x91   : > { %2241 = vmatpush3.bf16.msra.mxu0 %v2352_v22 }
  0x92   : > { %2271 = vmatpush3.bf16.msra.mxu1 %v2352_v22  ;;  %2242 = vmatprep.subr.bf16.mxu0 %v2353_v13 }
  0x93   : > { %2264 = vmatprep.subr.bf16.mxu1 %v2353_v13 }
  0x94   : > { %2211 = vmatmul.mubr.bf16.gmra.mxu0 %v1220_v14 }
  0x95   : > { %2243 = vmatpush3.bf16.msra.mxu0 %v2353_v13  ;;  %2235 = vmatmul.mubr.bf16.gmra.mxu1 %v1370_v7 }
  0x96   : > { %2272 = vmatpush3.bf16.msra.mxu1 %v2353_v13  ;;  %2244 = vmatprep.subr.bf16.mxu0 %v2354_v57 }
  0x97   : > { %2265 = vmatprep.subr.bf16.mxu1 %v2354_v57  ;;  %2254 = vmatprep.mubr.bf16.mxu0 %v2663_v34 }
  0x98   : > { %2258 = vmatprep.mubr.bf16.mxu1 %v2697_v46 }
  0x99   : > { %2245 = vmatpush3.bf16.msra.mxu0 %v2354_v57 }
  0x9a   : > { %2273 = vmatpush3.bf16.msra.mxu1 %v2354_v57  ;;  %2246 = vmatprep.subr.bf16.mxu0 %v2355_v3 }
  0x9b   : > { %2266 = vmatprep.subr.bf16.mxu1 %v2355_v3 }
  0x9d   : > { %2247 = vmatpush3.bf16.msra.mxu0 %v2355_v3 }
  0x9e   : > { %2274 = vmatpush3.bf16.msra.mxu1 %v2355_v3  ;;  %2248 = vmatprep.subr.bf16.mxu0 %v2356_v8 }
  0x9f   : > { %2267 = vmatprep.subr.bf16.mxu1 %v2356_v8 }
  0xa1   : > { %2249 = vmatpush3.bf16.msra.mxu0 %v2356_v8 }
  0xa2   : > { %2275 = vmatpush3.bf16.msra.mxu1 %v2356_v8  ;;  %2250 = vmatprep.subr.bf16.mxu0 %v2357_v16 }
  0xa3   : > { %2268 = vmatprep.subr.bf16.mxu1 %v2357_v16 }
  0xa5   : > { %2251 = vmatpush3.bf16.msra.mxu0 %v2357_v16 }
  0xa6   : > { %2276 = vmatpush3.bf16.msra.mxu1 %v2357_v16  ;;  %2252 = vmatprep.subr.bf16.mxu0 %v2358_v23 }
  0xa7   : > { %2269 = vmatprep.subr.bf16.mxu1 %v2358_v23 }
  0xa9   : > { %2253 = vmatpush3.bf16.msra.mxu0 %v2358_v23 }
  0xaa   : > { %2277 = vmatpush3.bf16.msra.mxu1 %v2358_v23 }
  0xac   : > { %2255 = vmatmul.mubr.bf16.vlgmr.msra.gmra.mxu0 %v2677_v39 }
  0xad   : > { %2259 = vmatmul.mubr.bf16.vlgmr.msra.gmra.mxu1 %v1520_v26 }
  0xec   : > { %v2064_v30 = vpop.f32.mrf.mxu0 }
  0xed   : > { %v2088_v32 = vpop.f32.mrf.mxu1  ;;  %v452_v22 = vadd.f32 %v2064_v30, %v1733_v20 }
  0xee   : > { %v419_v31 = vpop.f32.mrf.mxu0 }
  0xef   : > { %v569_v34 = vpop.f32.mrf.mxu1  ;;  %v450_v7 = vadd.f32 %v1733_v20, %v419_v31  ;;  %v602_v3 = vadd.f32 %v2088_v32, %v452_v22 }
  0xf0   : > { %v2065_v33 = vpop.f32.mrf.mxu0 }
  0xf1   : > { %v2836_v37 = vpop.f32.mrf.mxu1  ;;  %v453_v8 = vadd.f32 %v2065_v33, %v1733_v20 }
  0xf2   : > { %v422_v35 = vpop.f32.mrf.mxu0 }
  0xf3   : > { %v2838_v40 = vpop.f32.mrf.mxu1  ;;  %v603_v30 = vadd.f32 %v2836_v37, %v453_v8 }
  0xf4   : > { %v2068_v36 = vpop.f32.mrf.mxu0 }
  0xf5   : > { %v2092_v41 = vpop.f32.mrf.mxu1  ;;  %v456_v24 = vadd.f32 %v2068_v36, %v1733_v20 }
  0xf6   : > { %v435_v38 = vpop.f32.mrf.mxu0 }
  0xf7   : > { %v585_v43 = vpop.f32.mrf.mxu1  ;;  %v454_v57 = vadd.f32 %v1733_v20, %v435_v38  ;;  %v606_v23 = vadd.f32 %v2092_v41, %v456_v24 }
  0xf8   : > { %v2069_v42 = vpop.f32.mrf.mxu0 }
  0xf9   : > { %v2093_v46 = vpop.f32.mrf.mxu1  ;;  %v457_v25 = vadd.f32 %v2069_v42, %v1733_v20 }
  0xfa   : > { %v438_v44 = vpop.f32.mrf.mxu0 }
  0xfb   : > { %v2840_v47 = vpop.f32.mrf.mxu1  ;;  %v607_v31 = vadd.f32 %v2093_v46, %v457_v25 }
 0x10c   : > { %v2112_v45 = vpop.f32.mrf.mxu0 }
 0x10d   : > { %v2136_v48 = vpop.f32.mrf.mxu1 }
 0x10e   : > { %v719_v39 = vpop.f32.mrf.mxu0 }
 0x10f   : > { %v2842_v54 = vpop.f32.mrf.mxu1 }
 0x110   : > { %v2113_v53 = vpop.f32.mrf.mxu0 }
 0x111   : > { %v2846_v56 = vpop.f32.mrf.mxu1  ;;  %v753_v41 = vadd.f32 %v2113_v53, %v603_v30 }
 0x112   : > { %v2844_v55 = vpop.f32.mrf.mxu0 }
 0x113   : > { %v2848_v27 = vpop.f32.mrf.mxu1 }
 0x114   : > { %v2116_v61 = vpop.f32.mrf.mxu0 }
 0x115   : > { %v2140_v63 = vpop.f32.mrf.mxu1 }
 0x116   : > { %v735_v28 = vpop.f32.mrf.mxu0 }
 0x117   : > { %v885_v1 = vpop.f32.mrf.mxu1 }
 0x118   : > { %v2117_v0 = vpop.f32.mrf.mxu0 }
 0x119   : > { %v2850_v4 = vpop.f32.mrf.mxu1 }
 0x11a   : > { %v738_v2 = vpop.f32.mrf.mxu0 }
 0x11b   : > { %v2852_v6 = vpop.f32.mrf.mxu1 }
 0x12c   : > { %v2160_v5 = vpop.f32.mrf.mxu0 }
 0x12d   : > { %v2184_v10 = vpop.f32.mrf.mxu1 }
 0x12e   : > { %v1019_v9 = vpop.f32.mrf.mxu0 }
 0x12f   : > { %v2854_v12 = vpop.f32.mrf.mxu1 }
 0x130   : > { %v2161_v11 = vpop.f32.mrf.mxu0 }
 0x131   : > { %v2858_v29 = vpop.f32.mrf.mxu1 }
 0x132   : > { %v2856_v15 = vpop.f32.mrf.mxu0  ;;  %2924 = vst [vmem:[#allocation3_spill] sm:$0xff] %v2858_v29  ;;  %v455_v29 = vadd.f32 %v1733_v20, %v438_v44 }
 0x133   : > { %v2860_v58 = vpop.f32.mrf.mxu1 }
 0x134   : > { %v2164_v50 = vpop.f32.mrf.mxu0  ;;  %2925 = vst [vmem:[#allocation4_spill] sm:$0xff] %v2860_v58  ;;  %v752_v58 = vadd.f32 %v2112_v45, %v602_v3  ;;  %v757_v45 = vadd.f32 %v2117_v0, %v607_v31 }
 0x135   : > { %v2188_v17 = vpop.f32.mrf.mxu1 }
 0x136   : > { %v1035_v51 = vpop.f32.mrf.mxu0  ;;  %v902_v22 = vadd.f32 %v2136_v48, %v752_v58  ;;  %v907_v48 = vadd.f32 %v2850_v4, %v757_v45 }
 0x137   : > { %v2862_v59 = vpop.f32.mrf.mxu1 }
 0x138   : > { %2926 = vst [vmem:[#allocation5_spill] sm:$0xff] %v2862_v59  ;;  %v2165_v60 = vpop.f32.mrf.mxu0  ;;  %v756_v59 = vadd.f32 %v2116_v61, %v606_v23  ;;  %v1052_v37 = vadd.f32 %v2160_v5, %v902_v22 }
 0x139   : > { %v2864_v62 = vpop.f32.mrf.mxu1 }
 0x13a   : > { %2927 = vst [vmem:[#allocation6_spill] sm:$0xff] %v2864_v62  ;;  %v1038_v18 = vpop.f32.mrf.mxu0  ;;  %v604_v62 = vadd.f32 %v585_v43, %v454_v57 }
 0x13b   : > { %v2866_v49 = vpop.f32.mrf.mxu1 }
 0x13c   : > { %2928 = vst [vmem:[#allocation7_spill] sm:$0xff] %v2866_v49  ;;  %v600_v49 = vadd.f32 %v569_v34, %v450_v7  ;;  %v754_v38 = vadd.f32 %v735_v28, %v604_v62  ;;  %v605_v34 = vadd.f32 %v2840_v47, %v455_v29  ;;  %v903_v28 = vadd.f32 %v2846_v56, %v753_v41 }
 0x13e   : > { %v755_v61 = vadd.f32 %v738_v2, %v605_v34  ;;  %v1053_v0 = vadd.f32 %v2161_v11, %v903_v28 }
 0x141   : > { %v2933_v11 = vld [vmem:[#allocation6_spill] sm:$0xff] }
 0x14c   : > { %v2208_v52 = vpop.f32.mrf.mxu0 }
 0x14d   : > { %v2868_v19 = vpop.f32.mrf.mxu1 }
 0x14e   : > { %2929 = vst [vmem:[#allocation8_spill] sm:$0xff] %v2868_v19  ;;  %v1320_v21 = vpop.f32.mrf.mxu0  ;;  %v451_v19 = vadd.f32 %v1733_v20, %v422_v35  ;;  %v906_v35 = vadd.f32 %v2140_v63, %v756_v59  ;;  %v1202_v63 = vadd.f32 %v2184_v10, %v1052_v37  ;;  %v2932_v59 = vld [vmem:[#allocation3_spill] sm:$0xff] }
 0x14f   : > { %v2873_v13 = vpop.f32.mrf.mxu1 }
 0x150   : > { %2930 = vst [vmem:[#allocation9_spill] sm:$0xff] %v2873_v13  ;;  %v2209_v14 = vpop.f32.mrf.mxu0  ;;  %v750_v13 = vadd.f32 %v719_v39, %v600_v49  ;;  %v601_v33 = vadd.f32 %v2838_v40, %v451_v19  ;;  %v904_v39 = vadd.f32 %v885_v1, %v754_v38  ;;  %v1056_v49 = vadd.f32 %v2164_v50, %v906_v35 }
 0x151   : > { %v2875_v16 = vpop.f32.mrf.mxu1  ;;  %v1353_v50 = vadd.f32 %v2208_v52, %v1202_v63  ;;  %v2936_v52 = vld [vmem:[#allocation7_spill] sm:$0xff] }
 0x152   : > { %v1323_v26 = vpop.f32.mrf.mxu0  ;;  %v900_v43 = vadd.f32 %v2842_v54, %v750_v13  ;;  %v751_v44 = vadd.f32 %v2844_v55, %v601_v33  ;;  %v1054_v53 = vadd.f32 %v1035_v51, %v904_v39  ;;  %v905_v54 = vadd.f32 %v2852_v6, %v755_v61 }
 0x153   : > { %v2878_v36 = vpop.f32.mrf.mxu1  ;;  %v1206_v29 = vadd.f32 %v2188_v17, %v1056_v49  ;;  %v1057_v55 = vadd.f32 %v2165_v60, %v907_v48  ;;  %v2934_v60 = vld [vmem:[#allocation4_spill] sm:$0xff] }
 0x154   : > { %v2212_v32 = vpop.f32.mrf.mxu0  ;;  %v1050_v62 = vadd.f32 %v1019_v9, %v900_v43  ;;  %v901_v47 = vadd.f32 %v2848_v27, %v751_v44  ;;  %v2931_v9 = vld [vmem:[#allocation5_spill] sm:$0xff]  ;;  %v1055_v4 = vadd.f32 %v1038_v18, %v905_v54  ;;  %v1203_v27 = vadd.f32 %v2932_v59, %v1053_v0 }
 0x155   : > { %v2236_v42 = vpop.f32.mrf.mxu1  ;;  %v1204_v58 = vadd.f32 %v2931_v9, %v1054_v53  ;;  %v1357_v51 = vadd.f32 %v2212_v32, %v1206_v29  ;;  %v1207_v19 = vadd.f32 %v2933_v11, %v1057_v55  ;;  %v2935_v13 = vld [vmem:[#allocation8_spill] sm:$0xff] }
 0x156   : > { %v1336_v46 = vpop.f32.mrf.mxu0  ;;  %v1200_v1 = vadd.f32 %v2854_v12, %v1050_v62  ;;  %v1051_v2 = vadd.f32 %v2856_v15, %v901_v47  ;;  %v1503_v12 = vadd.f32 %v2935_v13, %v1353_v50  ;;  %v1354_v24 = vadd.f32 %v2209_v14, %v1203_v27 }
 0x157   : > { %v1486_v40 = vpop.f32.mrf.mxu1  ;;  %v1355_v6 = vadd.f32 %v1336_v46, %v1204_v58  ;;  %v1205_v7 = vadd.f32 %v2936_v52, %v1055_v4  ;;  %v1507_v57 = vadd.f32 %v2236_v42, %v1357_v51 }
 0x158   : > { %v2213_v5 = vpop.f32.mrf.mxu0  ;;  %v1351_v10 = vadd.f32 %v1320_v21, %v1200_v1  ;;  %v1201_v20 = vadd.f32 %v2934_v60, %v1051_v2  ;;  %v2937_v21 = vld [vmem:[#allocation9_spill] sm:$0xff]  ;;  %v1504_v33 = vadd.f32 %v2875_v16, %v1354_v24 }
 0x159   : > { %v2237_v56 = vpop.f32.mrf.mxu1  ;;  %v1358_v3 = vadd.f32 %v2213_v5, %v1207_v19  ;;  %v1505_v30 = vadd.f32 %v1486_v40, %v1355_v6 }
 0x15a   : > { %v1339_v17 = vpop.f32.mrf.mxu0  ;;  %v1501_v8 = vadd.f32 %v2937_v21, %v1351_v10  ;;  %v1352_v23 = vadd.f32 %v1323_v26, %v1201_v20 }
 0x15b   : > { %v1489_v15 = vpop.f32.mrf.mxu1  ;;  %v1356_v31 = vadd.f32 %v1339_v17, %v1205_v7  ;;  %v1508_v42 = vadd.f32 %v2237_v56, %v1358_v3 }
 0x15c   : > { %v1502_v35 = vadd.f32 %v2878_v36, %v1352_v23 }
 0x15d   : > { %v1506_v44 = vadd.f32 %v1489_v15, %v1356_v31 }
 0x16c   : > { %v2256_v18 = vpop.f32.mrf.mxu0 }
 0x16d   : > { %v1653_v25 = vadd.f32 %v2256_v18, %v1503_v12  ;;  %v2260_v14 = vpop.f32.mrf.mxu1 }
 0x16e   : > { %v1657_v38 = vadd.f32 %v2260_v14, %v1507_v57  ;;  %v1620_v32 = vpop.f32.mrf.mxu0 }
 0x16f   : > { %1661 = vst [vmem:[%s2901_s23 + $0x10] sm:$0xff] %v1653_v25  ;;  %v1651_v22 = vadd.f32 %v1620_v32, %v1501_v8  ;;  %v1636_v41 = vpop.f32.mrf.mxu1 }
 0x170   : > { %1665 = vst [vmem:[%s2901_s23 + $0x30] sm:$0xff] %v1657_v38  ;;  %v1655_v34 = vadd.f32 %v1636_v41, %v1505_v30  ;;  %v2257_v26 = vpop.f32.mrf.mxu0 }
 0x171   : > { %1659 = vst [vmem:[%s2901_s23] sm:$0xff] %v1651_v22  ;;  %v1654_v45 = vadd.f32 %v2257_v26, %v1504_v33  ;;  %v2261_v43 = vpop.f32.mrf.mxu1 }
 0x172   : > { %1663 = vst [vmem:[%s2901_s23 + $0x20] sm:$0xff] %v1655_v34  ;;  %v1658_v37 = vadd.f32 %v2261_v43, %v1508_v42  ;;  %v1623_v16 = vpop.f32.mrf.mxu0 }
 0x173   : > { %1662 = vst [vmem:[%s2901_s23 + $0x18] sm:$0xff] %v1654_v45  ;;  %v1652_v39 = vadd.f32 %v1623_v16, %v1502_v35  ;;  %v1639_v61 = vpop.f32.mrf.mxu1 }
 0x174   : > { %1666 = vst [vmem:[%s2901_s23 + $0x38] sm:$0xff] %v1658_v37  ;;  %v1656_v49 = vadd.f32 %v1639_v61, %v1506_v44 }
 0x175   : > { %1660 = vst [vmem:[%s2901_s23 + $0x8] sm:$0xff] %v1652_v39 }
 0x176   : > { %1664 = vst [vmem:[%s2901_s23 + $0x28] sm:$0xff] %v1656_v49 }
 0x177 PF: > { %s15_s18 = sadd.s32 1, %s2365_s18  }
 0x178   : > { %p12_p4 = scmp.ge.s32.totalorder %s15_s18, 4  }
 0x17a   :  { %14 = sbr.rel (!%p12_p4) target bundleno = 1 (0x1), region = 80 }

</bundles_post_ra>
